<compile_context>
chip_gen: v6e
topology: v6e:2x2x1
jax: 0.10.0
libtpu: 0.0.40
codegen_flags: <defaults>
</compile_context>

<pallas_src>
import math
from functools import partial

import jax
import jax.numpy as jnp
from jax import lax
from jax.experimental import pallas as pl
from jax.experimental.pallas import tpu as pltpu

K = 5      # kernel size of conv1
PAD = 2    # padding of conv1


def _vmem_capacity_bytes():
    """Physical VMEM of this generation (conservative fallback if unknown)."""
    try:
        info = pltpu.get_tpu_info()
        cap = getattr(info, "vmem_capacity_bytes", None)
        if cap:
            return int(cap)
    except Exception:
        pass
    return 64 * 1024 * 1024  # v7x-sized fallback: never over-ask


def _fold_factor(N, C):
    """Factor F of the conv batch to fold into channels for lane density."""
    if C % 128 == 0:
        return 1
    for f in range(1, N + 1):                 # smallest F keeps batch parallelism
        if N % f == 0 and (f * C) % 128 == 0:
            return f
    best = 1
    for f in range(1, N + 1):                 # fallback: fatten lanes up to ~512
        if N % f == 0 and f * C <= 512:
            best = f
    return best


def _plan_tiles(N2, H, W, CF, itemsize, vmem_cap):
    """Pick (nb, c_tile) so blocks are fat but the working set fits VMEM."""
    Hp, Wp = H + 2 * PAD, W + 2 * PAD

    def working_set(nb, ct):
        blk = nb * H * W * ct * itemsize       # one input / output block
        scr = nb * Hp * Wp * ct * itemsize     # padded scratch (input dtype)
        wts = 2 * (K * K + 1) * ct * 4         # weights + bias (double-buffered)
        return 4 * blk + scr + wts             # in+out, double-buffered

    if CF % 128 == 0:
        ct_candidates = [t for t in (512, 256, 128) if CF % t == 0] or [CF]
    else:
        ct_candidates = [CF]                   # last dim must be the full array dim

    budget = min(int(0.35 * vmem_cap), 40 * 1024 * 1024)
    target_blk = 2 * 1024 * 1024               # aim for ~2 MiB per input block
    divisors_up = [d for d in range(1, N2 + 1) if N2 % d == 0]

    nb, ct = 1, ct_candidates[-1]
    for cand_ct in ct_candidates:              # prefer larger channel tiles
        ok = [d for d in divisors_up if working_set(d, cand_ct) <= budget]
        if not ok:
            continue
        hit = [d for d in ok if d * H * W * cand_ct * itemsize >= target_blk]
        nb, ct = (hit[0] if hit else ok[-1]), cand_ct
        break
    # TODO(synk): add H-axis tiling with a 2-row halo for very large images
    # (needed if even the minimal block exceeds the VMEM budget, esp. on v7x).

    # Keep >= 2 steps on a parallel grid axis when possible so both v7x
    # TensorCores get work, unless that would make per-step blocks tiny.
    if CF // ct == 1 and N2 // nb == 1 and N2 >= 2:
        for d in reversed(divisors_up):
            if d < N2 and d * H * W * ct * itemsize >= (1 << 20):
                nb = d
                break
    return nb, ct, working_set(nb, ct)


def _dwconv_gelu_kernel(x_ref, w_ref, b_ref, o_ref, xp_ref):
    # x_ref : (nb, H, W, Ct)      input block, (folded) channels on the lane axis
    # w_ref : (K*K, Ct)           per-tap, per-lane weights
    # b_ref : (1, Ct)             bias
    # o_ref : (nb, H, W, Ct)      output block (folded NHWC)
    # xp_ref: (nb, Hp, Wp, Ct)    zero-padded input scratch (input dtype)
    nb, H, W, Ct = x_ref.shape
    Wp = W + 2 * PAD

    # Zero only the 2-wide halo border.  Done every step (perimeter-only, far
    # cheaper than a full memset) so it is megacore-safe: each core owns its
    # own uninitialized scratch.  The interior is fully overwritten below.
    row0 = jnp.zeros((nb, PAD, Wp, Ct), x_ref.dtype)
    xp_ref[:, :PAD, :, :] = row0
    xp_ref[:, PAD + H:, :, :] = row0
    col0 = jnp.zeros((nb, H, PAD, Ct), x_ref.dtype)
    xp_ref[:, PAD:PAD + H, :PAD, :] = col0
    xp_ref[:, PAD:PAD + H, PAD + W:, :] = col0
    # Stage the unpadded block into the interior of the padded scratch.
    xp_ref[:, PAD:PAD + H, PAD:PAD + W, :] = x_ref[...]

    w = w_ref[...].astype(jnp.float32)         # (25, Ct)
    bias = b_ref[...].astype(jnp.float32)      # (1, Ct)

    # 25-tap depthwise MAC.  kw-outer: the sublane (W-axis) realign happens
    # once per kw via the hoisted `slab`; kh-inner slices are free vreg-row
    # selects.  acc0/acc1 are independent chains so the 4 VALU slots stay full.
    acc0 = None
    acc1 = None
    for kw in range(K):
        slab = xp_ref[:, :, kw:kw + W, :].astype(jnp.float32)   # (nb, Hp, W, Ct)
        part = None
        for kh in range(K):
            term = slab[:, kh:kh + H, :, :] * w[kh * K + kw, :]
            part = term if part is None else part + term
        if kw % 2 == 0:
            acc0 = part if acc0 is None else acc0 + part
        else:
            acc1 = part if acc1 is None else acc1 + part
    acc = acc0 + acc1 + bias

    # Exact (erf) GELU -- matches torch.nn.GELU() default.
    out = 0.5 * acc * (1.0 + lax.erf(acc * (1.0 / math.sqrt(2.0))))
    o_ref[...] = out.astype(o_ref.dtype)


def depthwise_conv5x5_gelu_folded(x_f, w_f, b_f):
    """x_f: (N2, H, W, CF); w_f: (K*K, CF); b_f: (1, CF) -> (N2, H, W, CF)."""
    N2, H, W, CF = x_f.shape
    Hp, Wp = H + 2 * PAD, W + 2 * PAD
    itemsize = x_f.dtype.itemsize

    vmem_cap = _vmem_capacity_bytes()
    nb, c_tile, ws = _plan_tiles(N2, H, W, CF, itemsize, vmem_cap)
    num_nb, num_ct = N2 // nb, CF // c_tile

    # Generation-aware VMEM request: headroom above the working set, but never
    # the whole physical VMEM (compiler scratch / semaphores need room).
    vmem_limit = int(min(max(2 * ws, 32 * 1024 * 1024), int(0.9 * vmem_cap)))

    return pl.pallas_call(
        _dwconv_gelu_kernel,
        out_shape=jax.ShapeDtypeStruct((N2, H, W, CF), x_f.dtype),
        grid=(num_nb, num_ct),
        in_specs=[
            pl.BlockSpec((nb, H, W, c_tile), lambda ni, ci: (ni, 0, 0, ci)),
            pl.BlockSpec((K * K, c_tile), lambda ni, ci: (0, ci)),
            pl.BlockSpec((1, c_tile), lambda ni, ci: (0, ci)),
        ],
        out_specs=pl.BlockSpec((nb, H, W, c_tile), lambda ni, ci: (ni, 0, 0, ci)),
        scratch_shapes=[pltpu.VMEM((nb, Hp, Wp, c_tile), x_f.dtype)],
        compiler_params=pltpu.CompilerParams(
            dimension_semantics=("parallel", "parallel"),
            vmem_limit_bytes=vmem_limit),
    )(x_f, w_f, b_f)


@partial(jax.jit, static_argnums=3)
def dwconv_forward(x, weight, bias, inp_channels):
    """Replicates dwconv.forward. x: NCHW (b, c, h, w); weight: (C, 1, K, K)."""
    b, c, h, w = x.shape
    assert h * w == inp_channels * b, "required for the torch .view to be valid"
    N, C, H, W = b, inp_channels, b, c

    # torch: x.transpose(1,2).view(b, C, b, c) -> conv input (N, C, H, W).
    xr = jnp.transpose(x, (0, 2, 1, 3)).reshape(N, C, H, W)

    # Fold a factor F of the conv batch into the channel axis so the kernel's
    # lane dim is a multiple of 128: lane-dense MACs + unmasked stores.
    F = _fold_factor(N, C)
    N2, CF = N // F, F * C
    # x_f[n2, hh, ww, f*C + ch] = xr[n2*F + f, ch, hh, ww]
    x_f = jnp.transpose(xr.reshape(N2, F, C, H, W),
                        (0, 3, 4, 1, 2)).reshape(N2, H, W, CF)
    # TODO(synk): fold this relayout (and the unfold below) into the kernel via
    # manual DMA + in-kernel einshape to save one small HBM pass (mostly v5e).

    w_kkc = jnp.transpose(weight[:, 0].reshape(C, K * K)).astype(jnp.float32)  # (25, C)
    w_f = jnp.tile(w_kkc, (1, F))                                              # (25, CF)
    b_f = jnp.tile(bias.reshape(1, C).astype(jnp.float32), (1, F))             # (1, CF)

    y_f = depthwise_conv5x5_gelu_folded(x_f, w_f, b_f)                         # (N2, H, W, CF)

    # Unfold + flatten: out[n, hh*W+ww, ch]  == x.flatten(2).transpose(1,2).
    y = jnp.transpose(y_f.reshape(N2, H, W, F, C), (0, 3, 1, 2, 4))
    return y.reshape(N, H * W, C)


if __name__ == "__main__":
    inp_channels = 32
    # Shapes must satisfy h*w == inp_channels*b so the torch view is legal.
    b, c, h, w = 4, 16, 8, 16

    key = jax.random.PRNGKey(0)
    kx, kw_, kb = jax.random.split(key, 3)
    x = jax.random.normal(kx, (b, c, h, w), jnp.float32)

    # nn.Conv2d(inp, inp, 5, groups=inp): weight (inp, 1, 5, 5), bias (inp,)
    fan_in = 1 * K * K
    bound = 1.0 / math.sqrt(fan_in)
    weight = jax.random.uniform(kw_, (inp_channels, 1, K, K), jnp.float32,
                                -bound, bound)
    bias = jax.random.uniform(kb, (inp_channels,), jnp.float32, -bound, bound)

    out = jax.block_until_ready(dwconv_forward(x, weight, bias, inp_channels))
    assert out.shape == (b, b * c, inp_channels)

    # Pure-JAX reference check (depthwise conv + exact GELU + layout plumbing).
    xr = jnp.transpose(x, (0, 2, 1, 3)).reshape(b, inp_channels, b, c)
    ref = lax.conv_general_dilated(
        xr, jnp.transpose(weight, (2, 3, 1, 0)),     # HWIO
        window_strides=(1, 1), padding=((PAD, PAD), (PAD, PAD)),
        dimension_numbers=("NCHW", "HWIO", "NCHW"),
        feature_group_count=inp_channels) + bias[None, :, None, None]
    ref = 0.5 * ref * (1.0 + lax.erf(ref / math.sqrt(2.0)))
    ref = jnp.transpose(ref.reshape(b, inp_channels, b * c), (0, 2, 1))
    assert jnp.allclose(out, ref, atol=1e-4, rtol=1e-4), \
        float(jnp.max(jnp.abs(out - ref)))

    print("KERNEL_OK")
</pallas_src>

<mosaic_0001>
module attributes {stable_mosaic.version = 11 : i64} {
  func.func @_dwconv_gelu_kernel(%arg0: i32, %arg1: i32, %arg2: memref<1x4x16x128xf32, #tpu.memory_space<vmem>>, %arg3: memref<25x128xf32, #tpu.memory_space<vmem>>, %arg4: memref<1x128xf32, #tpu.memory_space<vmem>>, %arg5: memref<1x4x16x128xf32, #tpu.memory_space<vmem>>, %arg6: memref<1x8x20x128xf32, #tpu.memory_space<vmem>>) attributes {dimension_semantics = [#tpu.dimension_semantics<parallel>, #tpu.dimension_semantics<parallel>], iteration_bounds = array<i64: 1, 1>, scalar_prefetch = 0 : i64, scratch_operands = 1 : i64, tpu.core_type = #tpu.core_type<tc>, window_params = [{transform_indices = @transform_0, window_bounds = array<i64: 1, 4, 16, 128>}, {transform_indices = @transform_1, window_bounds = array<i64: 25, 128>}, {transform_indices = @transform_2, window_bounds = array<i64: 1, 128>}, {transform_indices = @transform_3, window_bounds = array<i64: 1, 4, 16, 128>}]} {
    %cst = arith.constant 0.000000e+00 : f32
    %0 = vector.broadcast %cst : f32 to vector<1x2x20x128xf32>
    %c0 = arith.constant 0 : index
    %c0_0 = arith.constant 0 : index
    %c0_1 = arith.constant 0 : index
    %c0_2 = arith.constant 0 : index
    %1 = vector.load %arg6[%c0, %c0_0, %c0_1, %c0_2] : memref<1x8x20x128xf32, #tpu.memory_space<vmem>>, vector<1x2x20x128xf32>
    tpu.vector_store %arg6[%c0, %c0_0, %c0_1, %c0_2], %0 {strides = array<i32>} : memref<1x8x20x128xf32, #tpu.memory_space<vmem>>, vector<1x2x20x128xf32>,
    %c0_3 = arith.constant 0 : index
    %c6 = arith.constant 6 : index
    %c0_4 = arith.constant 0 : index
    %c0_5 = arith.constant 0 : index
    %2 = vector.load %arg6[%c0_3, %c6, %c0_4, %c0_5] : memref<1x8x20x128xf32, #tpu.memory_space<vmem>>, vector<1x2x20x128xf32>
    tpu.vector_store %arg6[%c0_3, %c6, %c0_4, %c0_5], %0 {strides = array<i32>} : memref<1x8x20x128xf32, #tpu.memory_space<vmem>>, vector<1x2x20x128xf32>,
    %cst_6 = arith.constant 0.000000e+00 : f32
    %3 = vector.broadcast %cst_6 : f32 to vector<1x4x2x128xf32>
    %c0_7 = arith.constant 0 : index
    %c2 = arith.constant 2 : index
    %c0_8 = arith.constant 0 : index
    %c0_9 = arith.constant 0 : index
    %4 = vector.load %arg6[%c0_7, %c2, %c0_8, %c0_9] : memref<1x8x20x128xf32, #tpu.memory_space<vmem>>, vector<1x4x2x128xf32>
    tpu.vector_store %arg6[%c0_7, %c2, %c0_8, %c0_9], %3 {strides = array<i32>} : memref<1x8x20x128xf32, #tpu.memory_space<vmem>>, vector<1x4x2x128xf32>,
    %c0_10 = arith.constant 0 : index
    %c2_11 = arith.constant 2 : index
    %c18 = arith.constant 18 : index
    %c0_12 = arith.constant 0 : index
    %5 = vector.load %arg6[%c0_10, %c2_11, %c18, %c0_12] : memref<1x8x20x128xf32, #tpu.memory_space<vmem>>, vector<1x4x2x128xf32>
    tpu.vector_store %arg6[%c0_10, %c2_11, %c18, %c0_12], %3 {strides = array<i32>} : memref<1x8x20x128xf32, #tpu.memory_space<vmem>>, vector<1x4x2x128xf32>,
    %c0_13 = arith.constant 0 : index
    %c0_14 = arith.constant 0 : index
    %c0_15 = arith.constant 0 : index
    %c0_16 = arith.constant 0 : index
    %6 = vector.load %arg2[%c0_13, %c0_14, %c0_15, %c0_16] : memref<1x4x16x128xf32, #tpu.memory_space<vmem>>, vector<1x4x16x128xf32>
    %c0_17 = arith.constant 0 : index
    %c2_18 = arith.constant 2 : index
    %c2_19 = arith.constant 2 : index
    %c0_20 = arith.constant 0 : index
    %7 = vector.load %arg6[%c0_17, %c2_18, %c2_19, %c0_20] : memref<1x8x20x128xf32, #tpu.memory_space<vmem>>, vector<1x4x16x128xf32>
    tpu.vector_store %arg6[%c0_17, %c2_18, %c2_19, %c0_20], %6 {strides = array<i32>} : memref<1x8x20x128xf32, #tpu.memory_space<vmem>>, vector<1x4x16x128xf32>,
    %c0_21 = arith.constant 0 : index
    %c0_22 = arith.constant 0 : index
    %8 = vector.load %arg3[%c0_21, %c0_22] : memref<25x128xf32, #tpu.memory_space<vmem>>, vector<25x128xf32>
    %c0_23 = arith.constant 0 : index
    %c0_24 = arith.constant 0 : index
    %9 = vector.load %arg4[%c0_23, %c0_24] : memref<1x128xf32, #tpu.memory_space<vmem>>, vector<1x128xf32>
    %c0_25 = arith.constant 0 : index
    %c0_26 = arith.constant 0 : index
    %c0_27 = arith.constant 0 : index
    %c0_28 = arith.constant 0 : index
    %10 = vector.load %arg6[%c0_25, %c0_26, %c0_27, %c0_28] : memref<1x8x20x128xf32, #tpu.memory_space<vmem>>, vector<1x8x16x128xf32>
    %11 = vector.extract_strided_slice %10 {offsets = [0, 0, 0, 0], sizes = [1, 4, 16, 128], strides = [1, 1, 1, 1]} : vector<1x8x16x128xf32> to vector<1x4x16x128xf32>
    %12 = vector.extract_strided_slice %8 {offsets = [0, 0], sizes = [1, 128], strides = [1, 1]} : vector<25x128xf32> to vector<1x128xf32>
    %13 = vector.shape_cast %12 : vector<1x128xf32> to vector<128xf32>
    %14 = vector.shape_cast %13 : vector<128xf32> to vector<1x1x1x128xf32>
    %15 = vector.broadcast %14 : vector<1x1x1x128xf32> to vector<1x4x16x128xf32>
    %16 = arith.mulf %11, %15 : vector<1x4x16x128xf32>
    %17 = vector.extract_strided_slice %10 {offsets = [0, 1, 0, 0], sizes = [1, 4, 16, 128], strides = [1, 1, 1, 1]} : vector<1x8x16x128xf32> to vector<1x4x16x128xf32>
    %18 = vector.extract_strided_slice %8 {offsets = [5, 0], sizes = [1, 128], strides = [1, 1]} : vector<25x128xf32> to vector<1x128xf32>
    %19 = vector.shape_cast %18 : vector<1x128xf32> to vector<128xf32>
    %20 = vector.shape_cast %19 : vector<128xf32> to vector<1x1x1x128xf32>
    %21 = vector.broadcast %20 : vector<1x1x1x128xf32> to vector<1x4x16x128xf32>
    %22 = arith.mulf %17, %21 : vector<1x4x16x128xf32>
    %23 = arith.addf %16, %22 : vector<1x4x16x128xf32>
    %24 = vector.extract_strided_slice %10 {offsets = [0, 2, 0, 0], sizes = [1, 4, 16, 128], strides = [1, 1, 1, 1]} : vector<1x8x16x128xf32> to vector<1x4x16x128xf32>
    %25 = vector.extract_strided_slice %8 {offsets = [10, 0], sizes = [1, 128], strides = [1, 1]} : vector<25x128xf32> to vector<1x128xf32>
    %26 = vector.shape_cast %25 : vector<1x128xf32> to vector<128xf32>
    %27 = vector.shape_cast %26 : vector<128xf32> to vector<1x1x1x128xf32>
    %28 = vector.broadcast %27 : vector<1x1x1x128xf32> to vector<1x4x16x128xf32>
    %29 = arith.mulf %24, %28 : vector<1x4x16x128xf32>
    %30 = arith.addf %23, %29 : vector<1x4x16x128xf32>
    %31 = vector.extract_strided_slice %10 {offsets = [0, 3, 0, 0], sizes = [1, 4, 16, 128], strides = [1, 1, 1, 1]} : vector<1x8x16x128xf32> to vector<1x4x16x128xf32>
    %32 = vector.extract_strided_slice %8 {offsets = [15, 0], sizes = [1, 128], strides = [1, 1]} : vector<25x128xf32> to vector<1x128xf32>
    %33 = vector.shape_cast %32 : vector<1x128xf32> to vector<128xf32>
    %34 = vector.shape_cast %33 : vector<128xf32> to vector<1x1x1x128xf32>
    %35 = vector.broadcast %34 : vector<1x1x1x128xf32> to vector<1x4x16x128xf32>
    %36 = arith.mulf %31, %35 : vector<1x4x16x128xf32>
    %37 = arith.addf %30, %36 : vector<1x4x16x128xf32>
    %38 = vector.extract_strided_slice %10 {offsets = [0, 4, 0, 0], sizes = [1, 4, 16, 128], strides = [1, 1, 1, 1]} : vector<1x8x16x128xf32> to vector<1x4x16x128xf32>
    %39 = vector.extract_strided_slice %8 {offsets = [20, 0], sizes = [1, 128], strides = [1, 1]} : vector<25x128xf32> to vector<1x128xf32>
    %40 = vector.shape_cast %39 : vector<1x128xf32> to vector<128xf32>
    %41 = vector.shape_cast %40 : vector<128xf32> to vector<1x1x1x128xf32>
    %42 = vector.broadcast %41 : vector<1x1x1x128xf32> to vector<1x4x16x128xf32>
    %43 = arith.mulf %38, %42 : vector<1x4x16x128xf32>
    %44 = arith.addf %37, %43 : vector<1x4x16x128xf32>
    %c0_29 = arith.constant 0 : index
    %c0_30 = arith.constant 0 : index
    %c1 = arith.constant 1 : index
    %c0_31 = arith.constant 0 : index
    %45 = vector.load %arg6[%c0_29, %c0_30, %c1, %c0_31] : memref<1x8x20x128xf32, #tpu.memory_space<vmem>>, vector<1x8x16x128xf32>
    %46 = vector.extract_strided_slice %45 {offsets = [0, 0, 0, 0], sizes = [1, 4, 16, 128], strides = [1, 1, 1, 1]} : vector<1x8x16x128xf32> to vector<1x4x16x128xf32>
    %47 = vector.extract_strided_slice %8 {offsets = [1, 0], sizes = [1, 128], strides = [1, 1]} : vector<25x128xf32> to vector<1x128xf32>
    %48 = vector.shape_cast %47 : vector<1x128xf32> to vector<128xf32>
    %49 = vector.shape_cast %48 : vector<128xf32> to vector<1x1x1x128xf32>
    %50 = vector.broadcast %49 : vector<1x1x1x128xf32> to vector<1x4x16x128xf32>
    %51 = arith.mulf %46, %50 : vector<1x4x16x128xf32>
    %52 = vector.extract_strided_slice %45 {offsets = [0, 1, 0, 0], sizes = [1, 4, 16, 128], strides = [1, 1, 1, 1]} : vector<1x8x16x128xf32> to vector<1x4x16x128xf32>
    %53 = vector.extract_strided_slice %8 {offsets = [6, 0], sizes = [1, 128], strides = [1, 1]} : vector<25x128xf32> to vector<1x128xf32>
    %54 = vector.shape_cast %53 : vector<1x128xf32> to vector<128xf32>
    %55 = vector.shape_cast %54 : vector<128xf32> to vector<1x1x1x128xf32>
    %56 = vector.broadcast %55 : vector<1x1x1x128xf32> to vector<1x4x16x128xf32>
    %57 = arith.mulf %52, %56 : vector<1x4x16x128xf32>
    %58 = arith.addf %51, %57 : vector<1x4x16x128xf32>
    %59 = vector.extract_strided_slice %45 {offsets = [0, 2, 0, 0], sizes = [1, 4, 16, 128], strides = [1, 1, 1, 1]} : vector<1x8x16x128xf32> to vector<1x4x16x128xf32>
    %60 = vector.extract_strided_slice %8 {offsets = [11, 0], sizes = [1, 128], strides = [1, 1]} : vector<25x128xf32> to vector<1x128xf32>
    %61 = vector.shape_cast %60 : vector<1x128xf32> to vector<128xf32>
    %62 = vector.shape_cast %61 : vector<128xf32> to vector<1x1x1x128xf32>
    %63 = vector.broadcast %62 : vector<1x1x1x128xf32> to vector<1x4x16x128xf32>
    %64 = arith.mulf %59, %63 : vector<1x4x16x128xf32>
    %65 = arith.addf %58, %64 : vector<1x4x16x128xf32>
    %66 = vector.extract_strided_slice %45 {offsets = [0, 3, 0, 0], sizes = [1, 4, 16, 128], strides = [1, 1, 1, 1]} : vector<1x8x16x128xf32> to vector<1x4x16x128xf32>
    %67 = vector.extract_strided_slice %8 {offsets = [16, 0], sizes = [1, 128], strides = [1, 1]} : vector<25x128xf32> to vector<1x128xf32>
    %68 = vector.shape_cast %67 : vector<1x128xf32> to vector<128xf32>
    %69 = vector.shape_cast %68 : vector<128xf32> to vector<1x1x1x128xf32>
    %70 = vector.broadcast %69 : vector<1x1x1x128xf32> to vector<1x4x16x128xf32>
    %71 = arith.mulf %66, %70 : vector<1x4x16x128xf32>
    %72 = arith.addf %65, %71 : vector<1x4x16x128xf32>
    %73 = vector.extract_strided_slice %45 {offsets = [0, 4, 0, 0], sizes = [1, 4, 16, 128], strides = [1, 1, 1, 1]} : vector<1x8x16x128xf32> to vector<1x4x16x128xf32>
    %74 = vector.extract_strided_slice %8 {offsets = [21, 0], sizes = [1, 128], strides = [1, 1]} : vector<25x128xf32> to vector<1x128xf32>
    %75 = vector.shape_cast %74 : vector<1x128xf32> to vector<128xf32>
    %76 = vector.shape_cast %75 : vector<128xf32> to vector<1x1x1x128xf32>
    %77 = vector.broadcast %76 : vector<1x1x1x128xf32> to vector<1x4x16x128xf32>
    %78 = arith.mulf %73, %77 : vector<1x4x16x128xf32>
    %79 = arith.addf %72, %78 : vector<1x4x16x128xf32>
    %c0_32 = arith.constant 0 : index
    %c0_33 = arith.constant 0 : index
    %c2_34 = arith.constant 2 : index
    %c0_35 = arith.constant 0 : index
    %80 = vector.load %arg6[%c0_32, %c0_33, %c2_34, %c0_35] : memref<1x8x20x128xf32, #tpu.memory_space<vmem>>, vector<1x8x16x128xf32>
    %81 = vector.extract_strided_slice %80 {offsets = [0, 0, 0, 0], sizes = [1, 4, 16, 128], strides = [1, 1, 1, 1]} : vector<1x8x16x128xf32> to vector<1x4x16x128xf32>
    %82 = vector.extract_strided_slice %8 {offsets = [2, 0], sizes = [1, 128], strides = [1, 1]} : vector<25x128xf32> to vector<1x128xf32>
    %83 = vector.shape_cast %82 : vector<1x128xf32> to vector<128xf32>
    %84 = vector.shape_cast %83 : vector<128xf32> to vector<1x1x1x128xf32>
    %85 = vector.broadcast %84 : vector<1x1x1x128xf32> to vector<1x4x16x128xf32>
    %86 = arith.mulf %81, %85 : vector<1x4x16x128xf32>
    %87 = vector.extract_strided_slice %80 {offsets = [0, 1, 0, 0], sizes = [1, 4, 16, 128], strides = [1, 1, 1, 1]} : vector<1x8x16x128xf32> to vector<1x4x16x128xf32>
    %88 = vector.extract_strided_slice %8 {offsets = [7, 0], sizes = [1, 128], strides = [1, 1]} : vector<25x128xf32> to vector<1x128xf32>
    %89 = vector.shape_cast %88 : vector<1x128xf32> to vector<128xf32>
    %90 = vector.shape_cast %89 : vector<128xf32> to vector<1x1x1x128xf32>
    %91 = vector.broadcast %90 : vector<1x1x1x128xf32> to vector<1x4x16x128xf32>
    %92 = arith.mulf %87, %91 : vector<1x4x16x128xf32>
    %93 = arith.addf %86, %92 : vector<1x4x16x128xf32>
    %94 = vector.extract_strided_slice %80 {offsets = [0, 2, 0, 0], sizes = [1, 4, 16, 128], strides = [1, 1, 1, 1]} : vector<1x8x16x128xf32> to vector<1x4x16x128xf32>
    %95 = vector.extract_strided_slice %8 {offsets = [12, 0], sizes = [1, 128], strides = [1, 1]} : vector<25x128xf32> to vector<1x128xf32>
    %96 = vector.shape_cast %95 : vector<1x128xf32> to vector<128xf32>
    %97 = vector.shape_cast %96 : vector<128xf32> to vector<1x1x1x128xf32>
    %98 = vector.broadcast %97 : vector<1x1x1x128xf32> to vector<1x4x16x128xf32>
    %99 = arith.mulf %94, %98 : vector<1x4x16x128xf32>
    %100 = arith.addf %93, %99 : vector<1x4x16x128xf32>
    %101 = vector.extract_strided_slice %80 {offsets = [0, 3, 0, 0], sizes = [1, 4, 16, 128], strides = [1, 1, 1, 1]} : vector<1x8x16x128xf32> to vector<1x4x16x128xf32>
    %102 = vector.extract_strided_slice %8 {offsets = [17, 0], sizes = [1, 128], strides = [1, 1]} : vector<25x128xf32> to vector<1x128xf32>
    %103 = vector.shape_cast %102 : vector<1x128xf32> to vector<128xf32>
    %104 = vector.shape_cast %103 : vector<128xf32> to vector<1x1x1x128xf32>
    %105 = vector.broadcast %104 : vector<1x1x1x128xf32> to vector<1x4x16x128xf32>
    %106 = arith.mulf %101, %105 : vector<1x4x16x128xf32>
    %107 = arith.addf %100, %106 : vector<1x4x16x128xf32>
    %108 = vector.extract_strided_slice %80 {offsets = [0, 4, 0, 0], sizes = [1, 4, 16, 128], strides = [1, 1, 1, 1]} : vector<1x8x16x128xf32> to vector<1x4x16x128xf32>
    %109 = vector.extract_strided_slice %8 {offsets = [22, 0], sizes = [1, 128], strides = [1, 1]} : vector<25x128xf32> to vector<1x128xf32>
    %110 = vector.shape_cast %109 : vector<1x128xf32> to vector<128xf32>
    %111 = vector.shape_cast %110 : vector<128xf32> to vector<1x1x1x128xf32>
    %112 = vector.broadcast %111 : vector<1x1x1x128xf32> to vector<1x4x16x128xf32>
    %113 = arith.mulf %108, %112 : vector<1x4x16x128xf32>
    %114 = arith.addf %107, %113 : vector<1x4x16x128xf32>
    %115 = arith.addf %44, %114 : vector<1x4x16x128xf32>
    %c0_36 = arith.constant 0 : index
    %c0_37 = arith.constant 0 : index
    %c3 = arith.constant 3 : index
    %c0_38 = arith.constant 0 : index
    %116 = vector.load %arg6[%c0_36, %c0_37, %c3, %c0_38] : memref<1x8x20x128xf32, #tpu.memory_space<vmem>>, vector<1x8x16x128xf32>
    %117 = vector.extract_strided_slice %116 {offsets = [0, 0, 0, 0], sizes = [1, 4, 16, 128], strides = [1, 1, 1, 1]} : vector<1x8x16x128xf32> to vector<1x4x16x128xf32>
    %118 = vector.extract_strided_slice %8 {offsets = [3, 0], sizes = [1, 128], strides = [1, 1]} : vector<25x128xf32> to vector<1x128xf32>
    %119 = vector.shape_cast %118 : vector<1x128xf32> to vector<128xf32>
    %120 = vector.shape_cast %119 : vector<128xf32> to vector<1x1x1x128xf32>
    %121 = vector.broadcast %120 : vector<1x1x1x128xf32> to vector<1x4x16x128xf32>
    %122 = arith.mulf %117, %121 : vector<1x4x16x128xf32>
    %123 = vector.extract_strided_slice %116 {offsets = [0, 1, 0, 0], sizes = [1, 4, 16, 128], strides = [1, 1, 1, 1]} : vector<1x8x16x128xf32> to vector<1x4x16x128xf32>
    %124 = vector.extract_strided_slice %8 {offsets = [8, 0], sizes = [1, 128], strides = [1, 1]} : vector<25x128xf32> to vector<1x128xf32>
    %125 = vector.shape_cast %124 : vector<1x128xf32> to vector<128xf32>
    %126 = vector.shape_cast %125 : vector<128xf32> to vector<1x1x1x128xf32>
    %127 = vector.broadcast %126 : vector<1x1x1x128xf32> to vector<1x4x16x128xf32>
    %128 = arith.mulf %123, %127 : vector<1x4x16x128xf32>
    %129 = arith.addf %122, %128 : vector<1x4x16x128xf32>
    %130 = vector.extract_strided_slice %116 {offsets = [0, 2, 0, 0], sizes = [1, 4, 16, 128], strides = [1, 1, 1, 1]} : vector<1x8x16x128xf32> to vector<1x4x16x128xf32>
    %131 = vector.extract_strided_slice %8 {offsets = [13, 0], sizes = [1, 128], strides = [1, 1]} : vector<25x128xf32> to vector<1x128xf32>
    %132 = vector.shape_cast %131 : vector<1x128xf32> to vector<128xf32>
    %133 = vector.shape_cast %132 : vector<128xf32> to vector<1x1x1x128xf32>
    %134 = vector.broadcast %133 : vector<1x1x1x128xf32> to vector<1x4x16x128xf32>
    %135 = arith.mulf %130, %134 : vector<1x4x16x128xf32>
    %136 = arith.addf %129, %135 : vector<1x4x16x128xf32>
    %137 = vector.extract_strided_slice %116 {offsets = [0, 3, 0, 0], sizes = [1, 4, 16, 128], strides = [1, 1, 1, 1]} : vector<1x8x16x128xf32> to vector<1x4x16x128xf32>
    %138 = vector.extract_strided_slice %8 {offsets = [18, 0], sizes = [1, 128], strides = [1, 1]} : vector<25x128xf32> to vector<1x128xf32>
    %139 = vector.shape_cast %138 : vector<1x128xf32> to vector<128xf32>
    %140 = vector.shape_cast %139 : vector<128xf32> to vector<1x1x1x128xf32>
    %141 = vector.broadcast %140 : vector<1x1x1x128xf32> to vector<1x4x16x128xf32>
    %142 = arith.mulf %137, %141 : vector<1x4x16x128xf32>
    %143 = arith.addf %136, %142 : vector<1x4x16x128xf32>
    %144 = vector.extract_strided_slice %116 {offsets = [0, 4, 0, 0], sizes = [1, 4, 16, 128], strides = [1, 1, 1, 1]} : vector<1x8x16x128xf32> to vector<1x4x16x128xf32>
    %145 = vector.extract_strided_slice %8 {offsets = [23, 0], sizes = [1, 128], strides = [1, 1]} : vector<25x128xf32> to vector<1x128xf32>
    %146 = vector.shape_cast %145 : vector<1x128xf32> to vector<128xf32>
    %147 = vector.shape_cast %146 : vector<128xf32> to vector<1x1x1x128xf32>
    %148 = vector.broadcast %147 : vector<1x1x1x128xf32> to vector<1x4x16x128xf32>
    %149 = arith.mulf %144, %148 : vector<1x4x16x128xf32>
    %150 = arith.addf %143, %149 : vector<1x4x16x128xf32>
    %151 = arith.addf %79, %150 : vector<1x4x16x128xf32>
    %c0_39 = arith.constant 0 : index
    %c0_40 = arith.constant 0 : index
    %c4 = arith.constant 4 : index
    %c0_41 = arith.constant 0 : index
    %152 = vector.load %arg6[%c0_39, %c0_40, %c4, %c0_41] : memref<1x8x20x128xf32, #tpu.memory_space<vmem>>, vector<1x8x16x128xf32>
    %153 = vector.extract_strided_slice %152 {offsets = [0, 0, 0, 0], sizes = [1, 4, 16, 128], strides = [1, 1, 1, 1]} : vector<1x8x16x128xf32> to vector<1x4x16x128xf32>
    %154 = vector.extract_strided_slice %8 {offsets = [4, 0], sizes = [1, 128], strides = [1, 1]} : vector<25x128xf32> to vector<1x128xf32>
    %155 = vector.shape_cast %154 : vector<1x128xf32> to vector<128xf32>
    %156 = vector.shape_cast %155 : vector<128xf32> to vector<1x1x1x128xf32>
    %157 = vector.broadcast %156 : vector<1x1x1x128xf32> to vector<1x4x16x128xf32>
    %158 = arith.mulf %153, %157 : vector<1x4x16x128xf32>
    %159 = vector.extract_strided_slice %152 {offsets = [0, 1, 0, 0], sizes = [1, 4, 16, 128], strides = [1, 1, 1, 1]} : vector<1x8x16x128xf32> to vector<1x4x16x128xf32>
    %160 = vector.extract_strided_slice %8 {offsets = [9, 0], sizes = [1, 128], strides = [1, 1]} : vector<25x128xf32> to vector<1x128xf32>
    %161 = vector.shape_cast %160 : vector<1x128xf32> to vector<128xf32>
    %162 = vector.shape_cast %161 : vector<128xf32> to vector<1x1x1x128xf32>
    %163 = vector.broadcast %162 : vector<1x1x1x128xf32> to vector<1x4x16x128xf32>
    %164 = arith.mulf %159, %163 : vector<1x4x16x128xf32>
    %165 = arith.addf %158, %164 : vector<1x4x16x128xf32>
    %166 = vector.extract_strided_slice %152 {offsets = [0, 2, 0, 0], sizes = [1, 4, 16, 128], strides = [1, 1, 1, 1]} : vector<1x8x16x128xf32> to vector<1x4x16x128xf32>
    %167 = vector.extract_strided_slice %8 {offsets = [14, 0], sizes = [1, 128], strides = [1, 1]} : vector<25x128xf32> to vector<1x128xf32>
    %168 = vector.shape_cast %167 : vector<1x128xf32> to vector<128xf32>
    %169 = vector.shape_cast %168 : vector<128xf32> to vector<1x1x1x128xf32>
    %170 = vector.broadcast %169 : vector<1x1x1x128xf32> to vector<1x4x16x128xf32>
    %171 = arith.mulf %166, %170 : vector<1x4x16x128xf32>
    %172 = arith.addf %165, %171 : vector<1x4x16x128xf32>
    %173 = vector.extract_strided_slice %152 {offsets = [0, 3, 0, 0], sizes = [1, 4, 16, 128], strides = [1, 1, 1, 1]} : vector<1x8x16x128xf32> to vector<1x4x16x128xf32>
    %174 = vector.extract_strided_slice %8 {offsets = [19, 0], sizes = [1, 128], strides = [1, 1]} : vector<25x128xf32> to vector<1x128xf32>
    %175 = vector.shape_cast %174 : vector<1x128xf32> to vector<128xf32>
    %176 = vector.shape_cast %175 : vector<128xf32> to vector<1x1x1x128xf32>
    %177 = vector.broadcast %176 : vector<1x1x1x128xf32> to vector<1x4x16x128xf32>
    %178 = arith.mulf %173, %177 : vector<1x4x16x128xf32>
    %179 = arith.addf %172, %178 : vector<1x4x16x128xf32>
    %180 = vector.extract_strided_slice %152 {offsets = [0, 4, 0, 0], sizes = [1, 4, 16, 128], strides = [1, 1, 1, 1]} : vector<1x8x16x128xf32> to vector<1x4x16x128xf32>
    %181 = vector.extract_strided_slice %8 {offsets = [24, 0], sizes = [1, 128], strides = [1, 1]} : vector<25x128xf32> to vector<1x128xf32>
    %182 = vector.shape_cast %181 : vector<1x128xf32> to vector<128xf32>
    %183 = vector.shape_cast %182 : vector<128xf32> to vector<1x1x1x128xf32>
    %184 = vector.broadcast %183 : vector<1x1x1x128xf32> to vector<1x4x16x128xf32>
    %185 = arith.mulf %180, %184 : vector<1x4x16x128xf32>
    %186 = arith.addf %179, %185 : vector<1x4x16x128xf32>
    %187 = arith.addf %115, %186 : vector<1x4x16x128xf32>
    %188 = arith.addf %187, %151 : vector<1x4x16x128xf32>
    %189 = vector.shape_cast %9 : vector<1x128xf32> to vector<1x1x1x128xf32>
    %190 = vector.broadcast %189 : vector<1x1x1x128xf32> to vector<1x4x16x128xf32>
    %191 = arith.addf %188, %190 : vector<1x4x16x128xf32>
    %cst_42 = arith.constant 5.000000e-01 : f32
    %192 = vector.broadcast %cst_42 : f32 to vector<1x4x16x128xf32>
    %193 = arith.mulf %192, %191 : vector<1x4x16x128xf32>
    %cst_43 = arith.constant 0.707106769 : f32
    %194 = vector.broadcast %cst_43 : f32 to vector<1x4x16x128xf32>
    %195 = arith.mulf %191, %194 : vector<1x4x16x128xf32>
    %196 = math.erf %195 : vector<1x4x16x128xf32>
    %cst_44 = arith.constant 1.000000e+00 : f32
    %197 = vector.broadcast %cst_44 : f32 to vector<1x4x16x128xf32>
    %198 = arith.addf %197, %196 : vector<1x4x16x128xf32>
    %199 = arith.mulf %193, %198 : vector<1x4x16x128xf32>
    %c0_45 = arith.constant 0 : index
    %c0_46 = arith.constant 0 : index
    %c0_47 = arith.constant 0 : index
    %c0_48 = arith.constant 0 : index
    %200 = vector.load %arg5[%c0_45, %c0_46, %c0_47, %c0_48] : memref<1x4x16x128xf32, #tpu.memory_space<vmem>>, vector<1x4x16x128xf32>
    tpu.vector_store %arg5[%c0_45, %c0_46, %c0_47, %c0_48], %199 {strides = array<i32>} : memref<1x4x16x128xf32, #tpu.memory_space<vmem>>, vector<1x4x16x128xf32>,
    return
  }
  func.func @transform_0(%arg0: i32, %arg1: i32) -> (i32, i32, i32, i32) {
    %c0_i32 = arith.constant 0 : i32
    %c0_i32_0 = arith.constant 0 : i32
    %c0_i32_1 = arith.constant 0 : i32
    return %arg0, %c0_i32, %c0_i32_0, %arg1 : i32, i32, i32, i32
  }
  func.func @transform_1(%arg0: i32, %arg1: i32) -> (i32, i32) {
    %c0_i32 = arith.constant 0 : i32
    %c0_i32_0 = arith.constant 0 : i32
    return %c0_i32, %arg1 : i32, i32
  }
  func.func @transform_2(%arg0: i32, %arg1: i32) -> (i32, i32) {
    %c0_i32 = arith.constant 0 : i32
    %c0_i32_0 = arith.constant 0 : i32
    return %c0_i32, %arg1 : i32, i32
  }
  func.func @transform_3(%arg0: i32, %arg1: i32) -> (i32, i32, i32, i32) {
    %c0_i32 = arith.constant 0 : i32
    %c0_i32_0 = arith.constant 0 : i32
    %c0_i32_1 = arith.constant 0 : i32
    return %arg0, %c0_i32, %c0_i32_0, %arg1 : i32, i32, i32, i32
  }
}

</mosaic_0001>

<bundles_post_ra>
// kernel: squeeze.1
= control target key start
LH: loop header
LB: loop body
LE: loop exit
PB: predicated region body
PF: predicated region fallthrough
CT: control target
= control target key end

     0   :  { %vm3_vm0 = vcmask 261120   ;;  %s73_s0 = inlined_call_operand.vmem [shape: f32[32,5,5], index: 0, kind: input, shape index: {}]   ;;  %s74_s1 = inlined_call_operand.vmem [shape: f32[32,25], index: 1, kind: output, shape index: {}]  }
   0x1   :  { %v2_v0 = vld [vmem:[%s73_s0] sm:$0x1f]   ;;  %v25_v1 = vld [vmem:[%s73_s0 + $0x8] sm:$0x1f]   ;;  %v27_v2 = vld [vmem:[%s73_s0 + $0x10] sm:$0x1f]  }
   0x2   :  { %4 = vst.msk [vmem:[%s74_s1] sm:$0x1f] %vm3_vm0, %v2_v0   ;;  %26 = vst.msk [vmem:[%s74_s1 + $0x5] sm:$0x1f] %vm3_vm0, %v25_v1   ;;  %v29_v3 = vld [vmem:[%s73_s0 + $0x18] sm:$0x1f]  }
   0x3   :  { %28 = vst.msk [vmem:[%s74_s1 + $0xa] sm:$0x1f] %vm3_vm0, %v27_v2   ;;  %v31_v4 = vld [vmem:[%s73_s0 + $0x20] sm:$0x1f]   ;;  %30 = vst.msk [vmem:[%s74_s1 + $0xf] sm:$0x1f] %vm3_vm0, %v29_v3  }
   0x4   :  { %32 = vst.msk [vmem:[%s74_s1 + $0x14] sm:$0x1f] %vm3_vm0, %v31_v4  }

// kernel: tile.13
= control target key start
LH: loop header
LB: loop body
LE: loop exit
PB: predicated region body
PF: predicated region fallthrough
CT: control target
= control target key end

     0   :  { %vm128_vm0 = vcmask 1047556   ;;  %vm130_vm1 = vcmask 261120   ;;  %s335_s27 = smov 64   ;;  %s336_s7 = smov 32   ;;  %vm163_vm2 = vcmask 1048320   ;;  %vm202_vm3 = vcmask 785920   ;;  %s486_s0 = inlined_call_operand.vmem [shape: f32[25,4,32], index: 0, kind: input, shape index: {}]   ;;  %s487_s1 = inlined_call_operand.vmem [shape: f32[25,128], index: 1, kind: output, shape index: {}]  }
   0x1   :  { %v312_v0 = vld [vmem:[%s486_s0 + $0x1c] sm:$0xf]  ;;  %v313_v1 = vld [vmem:[%s486_s0 + $0x18] sm:$0xf]  ;;  %v314_v2 = vld [vmem:[%s486_s0 + $0x14] sm:$0xf] }
   0x2   :  { %94 = vst [vmem:[#allocation0 + $0x38] sm:$0xf] %v312_v0  ;;  %99 = vst [vmem:[#allocation0 + $0x30] sm:$0xf] %v313_v1  ;;  %v315_v3 = vld [vmem:[%s486_s0 + $0x10] sm:$0xf] }
   0x3   :  { %104 = vst [vmem:[#allocation0 + $0x28] sm:$0xf] %v314_v2  ;;  %v316_v4 = vld [vmem:[%s486_s0 + $0xc] sm:$0xf]  ;;  %v317_v5 = vld [vmem:[%s486_s0 + $0x8] sm:$0xf] }
   0x4   :  { %109 = vst [vmem:[#allocation0 + $0x20] sm:$0xf] %v315_v3  ;;  %114 = vst [vmem:[#allocation0 + $0x18] sm:$0xf] %v316_v4  ;;  %v318_v6 = vld [vmem:[%s486_s0 + $0x4] sm:$0xf] }
   0x5   :  { %119 = vst [vmem:[#allocation0 + $0x10] sm:$0xf] %v317_v5  ;;  %v124_v7 = vld [vmem:[%s486_s0] sm:$0xf]  ;;  %123 = vst [vmem:[#allocation0 + $0x8] sm:$0xf] %v318_v6 }
   0x6   :  { %125 = vst [vmem:[#allocation0] sm:$0xf] %v124_v7  ;;  %v295_v8 = vld [vmem:[%s486_s0 + $0x60] sm:$0xf]  ;;  %v304_v9 = vld [vmem:[%s486_s0 + $0x3c] sm:$0xf] }
   0x7   :  { %v305_v10 = vld [vmem:[%s486_s0 + $0x38] sm:$0xf]  ;;  %9 = vst [vmem:[#allocation0 + $0xc0] sm:$0xf] %v295_v8  ;;  %54 = vst [vmem:[#allocation0 + $0x78] sm:$0xf] %v304_v9 }
   0x8   :  { %59 = vst [vmem:[#allocation0 + $0x70] sm:$0xf] %v305_v10  ;;  %v306_v11 = vld [vmem:[%s486_s0 + $0x34] sm:$0xf]  ;;  %v307_v12 = vld [vmem:[%s486_s0 + $0x30] sm:$0xf] }
   0x9   :  { %v308_v13 = vld [vmem:[%s486_s0 + $0x2c] sm:$0xf]  ;;  %64 = vst [vmem:[#allocation0 + $0x68] sm:$0xf] %v306_v11  ;;  %69 = vst [vmem:[#allocation0 + $0x60] sm:$0xf] %v307_v12 }
   0xa   :  { %74 = vst [vmem:[#allocation0 + $0x58] sm:$0xf] %v308_v13  ;;  %v309_v14 = vld [vmem:[%s486_s0 + $0x28] sm:$0xf]  ;;  %v310_v15 = vld [vmem:[%s486_s0 + $0x24] sm:$0xf] }
   0xb   :  { %v311_v16 = vld [vmem:[%s486_s0 + $0x20] sm:$0xf]  ;;  %79 = vst [vmem:[#allocation0 + $0x50] sm:$0xf] %v309_v14  ;;  %84 = vst [vmem:[#allocation0 + $0x48] sm:$0xf] %v310_v15 }
   0xc   :  { %89 = vst [vmem:[#allocation0 + $0x40] sm:$0xf] %v311_v16  ;;  %v296_v17 = vld [vmem:[%s486_s0 + $0x5c] sm:$0xf]  ;;  %v297_v18 = vld [vmem:[%s486_s0 + $0x58] sm:$0xf] }
   0xd   :  { %v298_v19 = vld [vmem:[%s486_s0 + $0x54] sm:$0xf]  ;;  %14 = vst [vmem:[#allocation0 + $0xb8] sm:$0xf] %v296_v17  ;;  %19 = vst [vmem:[#allocation0 + $0xb0] sm:$0xf] %v297_v18 }
   0xe   :  { %24 = vst [vmem:[#allocation0 + $0xa8] sm:$0xf] %v298_v19  ;;  %v299_v20 = vld [vmem:[%s486_s0 + $0x50] sm:$0xf]  ;;  %v300_v21 = vld [vmem:[%s486_s0 + $0x4c] sm:$0xf] }
   0xf   :  { %v301_v22 = vld [vmem:[%s486_s0 + $0x48] sm:$0xf]  ;;  %29 = vst [vmem:[#allocation0 + $0xa0] sm:$0xf] %v299_v20  ;;  %34 = vst [vmem:[#allocation0 + $0x98] sm:$0xf] %v300_v21 }
  0x10   :  { %39 = vst [vmem:[#allocation0 + $0x90] sm:$0xf] %v301_v22  ;;  %v302_v23 = vld [vmem:[%s486_s0 + $0x44] sm:$0xf]  ;;  %v303_v24 = vld [vmem:[%s486_s0 + $0x40] sm:$0xf] }
  0x11   :  { %v158_v25 = vld [vmem:[#allocation0 + $0x3] ss:$8 sm:$0xf0]   ;;  %44 = vst [vmem:[#allocation0 + $0x88] sm:$0xf] %v302_v23  ;;  %s334_s0 = smov 96  }
  0x12   :  { %49 = vst [vmem:[#allocation0 + $0x80] sm:$0xf] %v303_v24  ;;  %v156_v26 = vld [vmem:[#allocation0 + $0x3] ss:$8 sm:$0xf]   ;;  %vm241_vm4 = vcmask 523520  }
  0x13   :  { %v160_v27 = vsel %vm128_vm0, %v158_v25, %v156_v26  ;;  %v188_v28 = vld [vmem:[#allocation0 + $0xc3] sm:$0x1]   ;;  %v195_v32 = vld [vmem:[#allocation0 + $0x2] ss:$8 sm:$0xf]  }
  0x14   :  { %161 = vrot.lane.b32.xlu0 %v160_v27, %s334_s0  ;;  %189 = vrot.lane.b32.xlu1 %v188_v28, %s334_s0  ;;  %v168_v29 = vld [vmem:[#allocation0 + $0x43] ss:$8 sm:$0xf0]   ;;  %v197_v33 = vld [vmem:[#allocation0 + $0x2] ss:$8 sm:$0xf0]  }
  0x15   :  { %v166_v30 = vld [vmem:[#allocation0 + $0x43] ss:$8 sm:$0xf]   ;;  %v207_v35 = vld [vmem:[#allocation0 + $0x42] ss:$8 sm:$0xf0]   ;;  %v199_v39 = vsel %vm128_vm0, %v197_v33, %v195_v32 }
  0x16   :  { %v170_v31 = vsel %vm128_vm0, %v168_v29, %v166_v30  ;;  %v179_v34 = vld [vmem:[#allocation0 + $0x83] ss:$8 sm:$0xf0]   ;;  %v205_v37 = vld [vmem:[#allocation0 + $0x42] ss:$8 sm:$0xf]  }
  0x17   :  { %v218_v41 = vld [vmem:[#allocation0 + $0x82] ss:$8 sm:$0xf0]   ;;  %v209_v42 = vsel %vm128_vm0, %v207_v35, %v205_v37  ;;  %v126_v43 = vld [vmem:[#allocation0] ss:$8 sm:$0xf]  }
  0x18   :  { %171 = vrot.lane.b32.xlu0 %v170_v31, %s334_s0  ;;  %v234_v44 = vld [vmem:[#allocation0 + $0x1] ss:$8 sm:$0xf]   ;;  %v127_v46 = vld [vmem:[#allocation0] ss:$8 sm:$0xf0]  }
  0x19   :  { %v177_v36 = vld [vmem:[#allocation0 + $0x83] ss:$8 sm:$0xf]   ;;  %v216_v40 = vld [vmem:[#allocation0 + $0x82] ss:$8 sm:$0xf]   ;;  %v129_v49 = vsel %vm128_vm0, %v127_v46, %v126_v43 }
  0x1a   :  { %v181_v38 = vsel %vm128_vm0, %v179_v34, %v177_v36  ;;  %v236_v45 = vld [vmem:[#allocation0 + $0x1] ss:$8 sm:$0xf0]   ;;  %v151_v47 = vld [vmem:[#allocation0 + $0xc0] sm:$0x1]   ;;  %v220_v48 = vsel %vm128_vm0, %v218_v41, %v216_v40  ;;  %131 = vst.msk [vmem:[%s487_s1] sm:$0xff] %vm130_vm1, %v129_v49  }
  0x1b   :  { %182 = vrot.lane.b32.xlu1 %v181_v38, %s334_s0  ;;  %321 = vst.msk [vmem:[%s487_s1 + $0x18] sm:$0x1] %vm130_vm1, %v151_v47   ;;  %v133_v50 = vld [vmem:[#allocation0 + $0x40] ss:$8 sm:$0xf]   ;;  %v238_v59 = vsel %vm128_vm0, %v236_v45, %v234_v44 }
  0x1c   :  { %200 = vrot.lane.b32.xlu0 %v199_v39, %s335_s27  ;;  %v135_v51 = vld [vmem:[#allocation0 + $0x40] ss:$8 sm:$0xf0]   ;;  %v227_v55 = vld [vmem:[#allocation0 + $0xc2] sm:$0x1]  }
  0x1d   :  { %v137_v52 = vsel %vm128_vm0, %v135_v51, %v133_v50  ;;  %v142_v53 = vld [vmem:[#allocation0 + $0x80] ss:$8 sm:$0xf]   ;;  %v244_v57 = vld [vmem:[#allocation0 + $0x41] ss:$8 sm:$0xf]  }
  0x1e   :  { %v144_v54 = vld [vmem:[#allocation0 + $0x80] ss:$8 sm:$0xf0]   ;;  %319 = vst.msk [vmem:[%s487_s1 + $0x8] sm:$0xff] %vm130_vm1, %v137_v52   ;;  %v266_v0 = vld [vmem:[#allocation0 + $0xc1] sm:$0x1]  }
  0x1f   :  { %210 = vrot.lane.b32.xlu1 %v209_v42, %s335_s27  ;;  %v146_v56 = vsel %vm128_vm0, %v144_v54, %v142_v53  ;;  %v246_v58 = vld [vmem:[#allocation0 + $0x41] ss:$8 sm:$0xf0]  }
  0x20   :  { %221 = vrot.lane.b32.xlu0 %v220_v48, %s335_s27  ;;  %320 = vst.msk [vmem:[%s487_s1 + $0x10] sm:$0xff] %vm130_vm1, %v146_v56   ;;  %v255_v60 = vld [vmem:[#allocation0 + $0x81] ss:$8 sm:$0xf]   ;;  %v248_v62 = vsel %vm128_vm0, %v246_v58, %v244_v57 }
  0x21   :  { %v257_v61 = vld [vmem:[#allocation0 + $0x81] ss:$8 sm:$0xf0]  }
  0x22   :  { %v259_v63 = vsel %vm128_vm0, %v257_v61, %v255_v60 }
  0x23   :  { %228 = vrot.lane.b32.xlu1 %v227_v55, %s335_s27 }
  0x24   :  { %239 = vrot.lane.b32.xlu0 %v238_v59, %s336_s7 }
  0x27   :  { %249 = vrot.lane.b32.xlu1 %v248_v62, %s336_s7 }
  0x28   :  { %260 = vrot.lane.b32.xlu0 %v259_v63, %s336_s7 }
  0x2b   :  { %267 = vrot.lane.b32.xlu1 %v266_v0, %s336_s7 }
  0x86   :  { %v162_v1 = vpop.permute.xlu0 %161   ;;  %v190_v2 = vpop.permute.xlu1 %189  }
  0x87   :  { %164 = vst.msk [vmem:[%s487_s1] sm:$0xff] %vm163_vm2, %v162_v1   ;;  %324 = vst.msk [vmem:[%s487_s1 + $0x18] sm:$0x1] %vm163_vm2, %v190_v2  }
  0x8a   :  { %v172_v3 = vpop.permute.xlu0 %171  }
  0x8b   :  { %322 = vst.msk [vmem:[%s487_s1 + $0x8] sm:$0xff] %vm163_vm2, %v172_v3  }
  0x8d   :  { %v183_v4 = vpop.permute.xlu1 %182  }
  0x8e   :  { %323 = vst.msk [vmem:[%s487_s1 + $0x10] sm:$0xff] %vm163_vm2, %v183_v4   ;;  %v201_v5 = vpop.permute.xlu0 %200  }
  0x8f   :  { %203 = vst.msk [vmem:[%s487_s1] sm:$0xff] %vm202_vm3, %v201_v5  }
  0x91   :  { %v211_v6 = vpop.permute.xlu1 %210  }
  0x92   :  { %325 = vst.msk [vmem:[%s487_s1 + $0x8] sm:$0xff] %vm202_vm3, %v211_v6   ;;  %v222_v7 = vpop.permute.xlu0 %221  }
  0x93   :  { %326 = vst.msk [vmem:[%s487_s1 + $0x10] sm:$0xff] %vm202_vm3, %v222_v7  }
  0x95   :  { %v229_v8 = vpop.permute.xlu1 %228  }
  0x96   :  { %327 = vst.msk [vmem:[%s487_s1 + $0x18] sm:$0x1] %vm202_vm3, %v229_v8   ;;  %v240_v9 = vpop.permute.xlu0 %239  }
  0x97   :  { %242 = vst.msk [vmem:[%s487_s1] sm:$0xff] %vm241_vm4, %v240_v9  }
  0x99   :  { %v250_v10 = vpop.permute.xlu1 %249  }
  0x9a   :  { %328 = vst.msk [vmem:[%s487_s1 + $0x8] sm:$0xff] %vm241_vm4, %v250_v10   ;;  %v261_v11 = vpop.permute.xlu0 %260  }
  0x9b   :  { %329 = vst.msk [vmem:[%s487_s1 + $0x10] sm:$0xff] %vm241_vm4, %v261_v11  }
  0x9d   :  { %v268_v12 = vpop.permute.xlu1 %267  }
  0x9e   :  { %330 = vst.msk [vmem:[%s487_s1 + $0x18] sm:$0x1] %vm241_vm4, %v268_v12  }

// kernel: dwconv_forward.1
= control target key start
LH: loop header
LB: loop body
LE: loop exit
PB: predicated region body
PF: predicated region fallthrough
CT: control target
= control target key end

     0   :  { %v73_v0 = vlaneseq  ;;  %v714_v1 = vmov 0.0   ;;  %s1442_s0 = inlined_call_operand.vmem [shape: f32[1,4,16,128], index: 0, kind: input, shape index: {}]   ;;  %s1443_s1 = inlined_call_operand.vmem [shape: f32[25,128], index: 1, kind: input, shape index: {}]   ;;  %s1444_s2 = inlined_call_operand.vmem [shape: f32[1,128], index: 2, kind: input, shape index: {}]   ;;  %s1445_s3 = inlined_call_operand.vmem [shape: f32[1,4,16,128], index: 3, kind: output, shape index: {}]  }
   0x1   :  { %14 = vst [vmem:[#allocation2] sm:$0xff] %v714_v1  ;;  %15 = vst [vmem:[#allocation2 + $0x8] sm:$0xff] %v714_v1  ;;  %v738_v2 = vld [vmem:[%s1442_s0] sm:$0xff]  ;;  %v743_v3 = vld [vmem:[%s1442_s0 + $0x8] sm:$0xff] }
   0x2   :  { %16 = vst [vmem:[#allocation2 + $0x10] sm:$0xf] %v714_v1  ;;  %17 = vst [vmem:[#allocation2 + $0x18] sm:$0xff] %v714_v1  ;;  %v748_v4 = vld [vmem:[%s1442_s0 + $0x10] sm:$0xff]  ;;  %v756_v5 = vld [vmem:[%s1442_s0 + $0x18] sm:$0xff]  ;;  %v74_v8 = vshrl.u32 %v73_v0, 7 }
   0x3   :  { %18 = vst [vmem:[#allocation2 + $0x20] sm:$0xff] %v714_v1  ;;  %19 = vst [vmem:[#allocation2 + $0x28] sm:$0xf] %v714_v1  ;;  %v761_v6 = vld [vmem:[%s1442_s0 + $0x20] sm:$0xff]  ;;  %v766_v7 = vld [vmem:[%s1442_s0 + $0x28] sm:$0xff] }
   0x4   :  { %21 = vst [vmem:[#allocation2 + $0x90] sm:$0xff] %v714_v1  ;;  %22 = vst [vmem:[#allocation2 + $0x98] sm:$0xff] %v714_v1  ;;  %v774_v9 = vld [vmem:[%s1442_s0 + $0x30] sm:$0xff]  ;;  %v779_v10 = vld [vmem:[%s1442_s0 + $0x38] sm:$0xff]  ;;  %v75_v14 = vsub.s32 0, %v74_v8  ;;  %v798_v15 = vsub.s32 5, %v74_v8 }
   0x5   :  { %23 = vst [vmem:[#allocation2 + $0xa0] sm:$0xf] %v714_v1  ;;  %24 = vst [vmem:[#allocation2 + $0xa8] sm:$0xff] %v714_v1  ;;  %v784_v11 = vld [vmem:[%s1443_s1] sm:$0xff]  ;;  %v791_v12 = vld [vmem:[%s1443_s1 + $0x8] sm:$0xff]  ;;  %v800_v16 = vsub.s32 2, %v74_v8 }
   0x6   :  { %25 = vst [vmem:[#allocation2 + $0xb0] sm:$0xff] %v714_v1  ;;  %26 = vst [vmem:[#allocation2 + $0xb8] sm:$0xf] %v714_v1  ;;  %v796_v13 = vld [vmem:[%s1443_s1 + $0x10] sm:$0xff]  ;;  %v802_v17 = vsub.s32 7, %v74_v8  ;;  %v804_v18 = vsub.s32 4, %v74_v8  ;;  %v809_v20 = vrot.slane %v784_v11, %v75_v14  ;;  %v813_v21 = vrot.slane %v784_v11, %v798_v15 }
   0x7   :  { %28 = vst [vmem:[#allocation2 + $0x30] sm:$0x3] %v714_v1  ;;  %29 = vst [vmem:[#allocation2 + $0x48] sm:$0x3] %v714_v1  ;;  %v806_v19 = vsub.s32 1, %v74_v8  ;;  %v815_v22 = vsub.s32 6, %v74_v8  ;;  %v821_v24 = vrot.slane %v791_v12, %v800_v16  ;;  %v857_v39 = vrot.slane %v796_v13, %v75_v14 }
   0x8   :  { %30 = vst [vmem:[#allocation2 + $0x60] sm:$0x3] %v714_v1  ;;  %31 = vst [vmem:[#allocation2 + $0x78] sm:$0x3] %v714_v1  ;;  %v817_v23 = vsub.s32 3, %v74_v8  ;;  %v825_v25 = vrot.slane %v791_v12, %v802_v17  ;;  %v829_v26 = vrot.slane %v796_v13, %v804_v18  ;;  %v836_v28 = vmul.f32 0.0, %v809_v20 }
   0x9   :  { %32 = vst [vmem:[#allocation2 + $0x42] sm:$0x3] %v714_v1  ;;  %33 = vst [vmem:[#allocation2 + $0x5a] sm:$0x3] %v714_v1  ;;  %v833_v27 = vrot.slane %v784_v11, %v806_v19  ;;  %v89_v29 = vmul.f32 0.0, %v813_v21  ;;  %v165_v30 = vld [vmem:[#allocation2 + $0x1] sm:$0xff]  ;;  %v843_v32 = vrot.slane %v784_v11, %v815_v22  ;;  %v861_v40 = vrot.slane %v784_v11, %v800_v16 }
   0xa   :  { %34 = vst [vmem:[#allocation2 + $0x72] sm:$0x3] %v714_v1  ;;  %35 = vst [vmem:[#allocation2 + $0x8a] sm:$0x3] %v714_v1  ;;  %v839_v31 = vld [vmem:[#allocation2 + $0x19] sm:$0xff]  ;;  %v847_v33 = vrot.slane %v791_v12, %v817_v23  ;;  %v273_v34 = vld [vmem:[#allocation2 + $0x2] sm:$0xff]  ;;  %v876_v46 = vrot.slane %v796_v13, %v798_v15  ;;  %v894_v56 = vrot.slane %v784_v11, %v802_v17 }
   0xb   :  { %1536 = vst [vmem:[#allocation3_spill] sm:$0xff] %v738_v2  ;;  %1537 = vst [vmem:[#allocation4_spill] sm:$0xff] %v743_v3  ;;  %v185_v38 = vmul.f32 %v833_v27, %v165_v30  ;;  %v866_v42 = vadd.f32 %v89_v29, %v836_v28  ;;  %v197_v45 = vmul.f32 %v843_v32, %v839_v31  ;;  %v886_v51 = vld [vmem:[#allocation2 + $0x1a] sm:$0xff]  ;;  %v389_v57 = vld [vmem:[#allocation2 + $0x3] sm:$0xff] }
   0xc   :  { %1538 = vst [vmem:[#allocation5_spill] sm:$0xff] %v748_v4  ;;  %44 = vst [vmem:[#allocation2 + $0x32] sm:$0xff] %v738_v2  ;;  %v293_v55 = vmul.f32 %v861_v40, %v273_v34  ;;  %v898_v58 = vrot.slane %v791_v12, %v804_v18  ;;  %v902_v59 = vrot.slane %v796_v13, %v806_v19  ;;  %v908_v61 = vld [vmem:[#allocation2 + $0x1b] sm:$0xff] }
   0xd   :  { %45 = vst [vmem:[#allocation2 + $0x3a] sm:$0xff] %v743_v3  ;;  %46 = vst [vmem:[#allocation2 + $0x4a] sm:$0xff] %v748_v4  ;;  %v205_v54 = vadd.f32 %v197_v45, %v185_v38  ;;  %v906_v60 = vrot.slane %v796_v13, %v815_v22  ;;  %v912_v62 = vrot.slane %v784_v11, %v817_v23 }
   0xe   :  { %1539 = vst [vmem:[#allocation6_spill] sm:$0xff] %v756_v5  ;;  %1540 = vst [vmem:[#allocation7_spill] sm:$0xff] %v761_v6  ;;  %v305_v1 = vmul.f32 %v894_v56, %v886_v51  ;;  %v917_v8 = vrot.slane %v791_v12, %v75_v14  ;;  %v325_v30 = vmul.f32 %v898_v58, %v738_v2 }
   0xf   :  { %1541 = vst [vmem:[#allocation8_spill] sm:$0xff] %v766_v7  ;;  %47 = vst [vmem:[#allocation2 + $0x52] sm:$0xff] %v756_v5  ;;  %v345_v34 = vmul.f32 %v902_v59, %v748_v4  ;;  %v409_v38 = vmul.f32 %v912_v62, %v389_v57  ;;  %v949_v57 = vrot.slane %v796_v13, %v802_v17 }
  0x10   :  { %48 = vst [vmem:[#allocation2 + $0x62] sm:$0xff] %v761_v6  ;;  %49 = vst [vmem:[#allocation2 + $0x6a] sm:$0xff] %v766_v7  ;;  %v313_v45 = vadd.f32 %v305_v1, %v293_v55  ;;  %v945_v55 = vrot.slane %v796_v13, %v800_v16  ;;  %v955_v1 = vrot.slane %v784_v11, %v804_v18 }
  0x11   :  { %1542 = vst [vmem:[#allocation9_spill] sm:$0xff] %v774_v9  ;;  %1543 = vst [vmem:[#allocation10_spill] sm:$0xff] %v779_v10  ;;  %v963_v16 = vrot.slane %v791_v12, %v806_v19 }
  0x12   :  { %50 = vst [vmem:[#allocation2 + $0x7a] sm:$0xff] %v774_v9  ;;  %51 = vst [vmem:[#allocation2 + $0x82] sm:$0xff] %v779_v10 }
  0x13   :  { %1544 = vst [vmem:[#allocation11_spill] sm:$0xff] %v809_v20  ;;  %v849_v35 = vld [vmem:[#allocation2 + $0x30] sm:$0xff]  ;;  %1550 = vst [vmem:[#allocation17_spill] sm:$0xff] %v886_v51  ;;  %v937_v20 = vld [vmem:[%s1443_s1 + $0x18] ss:$0 sm:$0xff] }
  0x14   :  { %1545 = vst [vmem:[#allocation12_spill] sm:$0xff] %v849_v35  ;;  %v851_v36 = vld [vmem:[#allocation2 + $0x48] sm:$0xff]  ;;  %v853_v37 = vld [vmem:[#allocation2 + $0x31] sm:$0xff]  ;;  %v109_v43 = vmul.f32 %v821_v24, %v849_v35  ;;  %1552 = vst [vmem:[#allocation19_spill] sm:$0xff] %v908_v61 }
  0x15   :  { %1546 = vst [vmem:[#allocation13_spill] sm:$0xff] %v851_v36  ;;  %1547 = vst [vmem:[#allocation14_spill] sm:$0xff] %v853_v37  ;;  %v870_v44 = vld [vmem:[#allocation2 + $0x49] sm:$0xff]  ;;  %v129_v47 = vmul.f32 %v825_v25, %v851_v36  ;;  %v217_v49 = vmul.f32 %v847_v33, %v853_v37  ;;  %v965_v4 = vld [vmem:[#allocation2 + $0x38] sm:$0xff] }
  0x16   :  { %1549 = vst [vmem:[#allocation16_spill] sm:$0xff] %v870_v44  ;;  %v237_v50 = vmul.f32 %v857_v39, %v870_v44  ;;  %v117_v52 = vadd.f32 %v109_v43, %v866_v42  ;;  %v930_v14 = vld [vmem:[#allocation2 + $0x4b] sm:$0xff]  ;;  %1558 = vst [vmem:[#allocation25_spill] sm:$0xff] %v965_v4  ;;  %v971_v18 = vld [vmem:[#allocation2 + $0x34] sm:$0xff] }
  0x17   :  { %v863_v41 = vld [vmem:[#allocation2 + $0x60] sm:$0xff]  ;;  %v225_v0 = vadd.f32 %v217_v49, %v205_v54  ;;  %v928_v49 = vld [vmem:[#allocation2 + $0x33] sm:$0xff]  ;;  %1554 = vst [vmem:[#allocation21_spill] sm:$0xff] %v930_v14  ;;  %v461_v11 = vmul.f32 %v945_v55, %v930_v14  ;;  %1559 = vst [vmem:[#allocation26_spill] sm:$0xff] %v971_v18 }
  0x18   :  { %1548 = vst [vmem:[#allocation15_spill] sm:$0xff] %v863_v41  ;;  %v149_v48 = vmul.f32 %v829_v26, %v863_v41  ;;  %v889_v53 = vld [vmem:[#allocation2 + $0x61] sm:$0xff]  ;;  %v137_v63 = vadd.f32 %v129_v47, %v117_v52  ;;  %v365_v47 = vmul.f32 %v906_v60, %v761_v6  ;;  %1553 = vst [vmem:[#allocation20_spill] sm:$0xff] %v928_v49  ;;  %v274_v51 = vld [vmem:[#allocation2 + $0xa] sm:$0xff] }
  0x19   :  { %1551 = vst [vmem:[#allocation18_spill] sm:$0xff] %v889_v53  ;;  %v257_v29 = vmul.f32 %v876_v46, %v889_v53  ;;  %v245_v43 = vadd.f32 %v237_v50, %v225_v0  ;;  %v421_v52 = vmul.f32 %v917_v8, %v908_v61  ;;  %v505_v54 = vld [vmem:[#allocation2 + $0x4] sm:$0xff]  ;;  %v941_v50 = vrot.slane %v791_v12, %v798_v15  ;;  %v951_v0 = vld [vmem:[#allocation2 + $0x1c] sm:$0xff] }
  0x1a   :  { %1555 = vst [vmem:[#allocation22_spill] sm:$0xff] %v951_v0  ;;  %v157_v10 = vadd.f32 %v149_v48, %v137_v63  ;;  %v333_v61 = vadd.f32 %v325_v30, %v313_v45  ;;  %v957_v9 = vld [vmem:[#allocation2 + $0x63] sm:$0xff]  ;;  %v525_v48 = vmul.f32 %v955_v1, %v505_v54  ;;  %v974_v63 = vld [vmem:[#allocation2 + $0x50] sm:$0xff]  ;;  %v537_v19 = vmul.f32 %v963_v16, %v951_v0 }
  0x1b   :  { %1556 = vst [vmem:[#allocation23_spill] sm:$0xff] %v957_v9  ;;  %v429_v15 = vadd.f32 %v421_v52, %v409_v38  ;;  %v959_v6 = vld [vmem:[#allocation2 + $0x64] sm:$0xff]  ;;  %v265_v17 = vadd.f32 %v257_v29, %v245_v43  ;;  %v441_v2 = vmul.f32 %v941_v50, %v928_v49  ;;  %1560 = vst [vmem:[#allocation27_spill] sm:$0xff] %v974_v63  ;;  %v976_v38 = vld [vmem:[#allocation2 + $0x4c] sm:$0xff] }
  0x1c   :  { %1557 = vst [vmem:[#allocation24_spill] sm:$0xff] %v959_v6  ;;  %v353_v30 = vadd.f32 %v345_v34, %v333_v61  ;;  %1561 = vst [vmem:[#allocation28_spill] sm:$0xff] %v976_v38  ;;  %v982_v29 = vrot.slane %v791_v12, %v815_v22  ;;  %v986_v43 = vrot.slane %v796_v13, %v817_v23  ;;  %v166_v45 = vld [vmem:[#allocation2 + $0x9] sm:$0xff]  ;;  %v996_v14 = vld [vmem:[#allocation2 + $0x21] sm:$0xff] }
  0x1d   :  { %v449_v52 = vadd.f32 %v441_v2, %v429_v15  ;;  %v481_v54 = vmul.f32 %v949_v57, %v957_v9  ;;  %v597_v61 = vmul.f32 %v937_v20, %v959_v6  ;;  %v992_v34 = vld [vmem:[#allocation2 + $0x68] sm:$0xff]  ;;  %v110_v0 = vmul.f32 %v821_v24, %v965_v4  ;;  %1563 = vst [vmem:[#allocation30_spill] sm:$0xff] %v996_v14  ;;  %v998_v12 = vld [vmem:[#allocation2 + $0x39] sm:$0xff]  ;;  %v1004_v15 = vld [vmem:[#allocation2 + $0x51] sm:$0xff] }
  0x1e   :  { %1562 = vst [vmem:[#allocation29_spill] sm:$0xff] %v992_v34  ;;  %1564 = vst [vmem:[#allocation31_spill] sm:$0xff] %v998_v12  ;;  %v373_v22 = vadd.f32 %v365_v47, %v353_v30  ;;  %v545_v13 = vadd.f32 %v537_v19, %v525_v48  ;;  %v557_v2 = vmul.f32 %v982_v29, %v971_v18  ;;  %v1010_v53 = vld [vmem:[#allocation2 + $0x22] sm:$0xff] }
  0x1f   :  { %v130_v23 = vmul.f32 %v825_v25, %v974_v63  ;;  %v469_v6 = vadd.f32 %v461_v11, %v449_v52  ;;  %v577_v9 = vmul.f32 %v986_v43, %v976_v38  ;;  %v118_v4 = vadd.f32 %v110_v0, %v866_v42  ;;  %v1014_v30 = vld [vmem:[#allocation2 + $0x69] sm:$0xff] }
  0x20   :  { %v186_v49 = vmul.f32 %v833_v27, %v166_v45  ;;  %v565_v47 = vadd.f32 %v557_v2, %v545_v13  ;;  %v150_v48 = vmul.f32 %v829_v26, %v992_v34  ;;  %1565 = vst [vmem:[#allocation32_spill] sm:$0xff] %v1014_v30  ;;  %v198_v19 = vmul.f32 %v843_v32, %v996_v14  ;;  %v390_v34 = vld [vmem:[#allocation2 + $0xb] sm:$0xff]  ;;  %v1025_v18 = vld [vmem:[#allocation2 + $0x23] sm:$0xff]  ;;  %v1027_v14 = vld [vmem:[#allocation2 + $0x3b] sm:$0xff] }
  0x21   :  { %v218_v11 = vmul.f32 %v847_v33, %v998_v12  ;;  %v381_v52 = vadd.f32 %v373_v22, %v157_v10  ;;  %v489_v63 = vadd.f32 %v481_v54, %v469_v6  ;;  %v138_v42 = vadd.f32 %v130_v23, %v118_v4  ;;  %1566 = vst [vmem:[#allocation33_spill] sm:$0xff] %v1025_v18  ;;  %v506_v22 = vld [vmem:[#allocation2 + $0xc] sm:$0xff]  ;;  %v1037_v23 = vld [vmem:[#allocation2 + $0x24] sm:$0xff] }
  0x22   :  { %v238_v0 = vmul.f32 %v857_v39, %v1004_v15  ;;  %v585_v45 = vadd.f32 %v577_v9, %v565_v47  ;;  %v206_v38 = vadd.f32 %v198_v19, %v186_v49  ;;  %v294_v13 = vmul.f32 %v861_v40, %v274_v51  ;;  %1567 = vst [vmem:[#allocation34_spill] sm:$0xff] %v1027_v14  ;;  %v1033_v9 = vld [vmem:[#allocation2 + $0x53] sm:$0xff]  ;;  %v1039_v47 = vld [vmem:[#allocation2 + $0x3c] sm:$0xff] }
  0x23   :  { %v306_v2 = vmul.f32 %v894_v56, %v1010_v53  ;;  %v497_v44 = vadd.f32 %v489_v63, %v265_v17  ;;  %v158_v12 = vadd.f32 %v150_v48, %v138_v42  ;;  %v258_v4 = vmul.f32 %v876_v46, %v1014_v30  ;;  %1568 = vst [vmem:[#allocation35_spill] sm:$0xff] %v1033_v9  ;;  %v1043_v63 = vld [vmem:[#allocation2 + $0x6b] sm:$0xff] }
  0x24   :  { %v326_v6 = vmul.f32 %v898_v58, %v743_v3  ;;  %v605_v10 = vadd.f32 %v597_v61, %v585_v45  ;;  %v226_v51 = vadd.f32 %v218_v11, %v206_v38  ;;  %v346_v54 = vmul.f32 %v902_v59, %v756_v5  ;;  %1569 = vst [vmem:[#allocation36_spill] sm:$0xff] %v1037_v23 }
  0x25   :  { %v314_v49 = vadd.f32 %v306_v2, %v294_v13  ;;  %1570 = vst [vmem:[#allocation37_spill] sm:$0xff] %v1039_v47  ;;  %v366_v17 = vmul.f32 %v906_v60, %v766_v7  ;;  %1571 = vst [vmem:[#allocation38_spill] sm:$0xff] %v1043_v63  ;;  %v410_v48 = vmul.f32 %v912_v62, %v390_v34  ;;  %v1052_v13 = vld [vmem:[#allocation2 + $0x54] sm:$0xff]  ;;  %v1057_v2 = vld [vmem:[%s1444_s2] ss:$0 sm:$0xff] }
  0x26   :  { %v422_v61 = vmul.f32 %v917_v8, %v1025_v18  ;;  %v442_v38 = vmul.f32 %v941_v50, %v1027_v14  ;;  %v613_v19 = vadd.f32 %v605_v10, %v381_v52  ;;  %v246_v11 = vadd.f32 %v238_v0, %v226_v51  ;;  %1572 = vst [vmem:[#allocation39_spill] sm:$0xff] %v1052_v13  ;;  %v1059_v7 = vld [vmem:[#allocation2 + $0x6c] sm:$0xff] }
  0x27   :  { %v334_v42 = vadd.f32 %v326_v6, %v314_v49  ;;  %v462_v45 = vmul.f32 %v945_v55, %v1033_v9  ;;  %1573 = vst [vmem:[#allocation40_spill] sm:$0xff] %v1059_v7  ;;  %v526_v18 = vmul.f32 %v955_v1, %v506_v22  ;;  %v538_v52 = vmul.f32 %v963_v16, %v1037_v23 }
  0x28   :  { %v430_v34 = vadd.f32 %v422_v61, %v410_v48  ;;  %v558_v0 = vmul.f32 %v982_v29, %v1039_v47  ;;  %v621_v6 = vadd.f32 %v613_v19, %v497_v44  ;;  %v266_v10 = vadd.f32 %v258_v4, %v246_v11  ;;  %v1070_v61 = vld [vmem:[#allocation2 + $0x78] sm:$0xff] }
  0x29   :  { %v354_v51 = vadd.f32 %v346_v54, %v334_v42  ;;  %v482_v49 = vmul.f32 %v949_v57, %v1043_v63  ;;  %v546_v14 = vadd.f32 %v538_v52, %v526_v18  ;;  %v578_v48 = vmul.f32 %v986_v43, %v1052_v13  ;;  %1574 = vst [vmem:[#allocation41_spill] sm:$0xff] %v1070_v61  ;;  %v1084_v52 = vld [vmem:[#allocation2 + $0x79] sm:$0xff] }
  0x2a   :  { %v450_v9 = vadd.f32 %v442_v38, %v430_v34  ;;  %v91_v22 = vmul.f32 %v813_v21, %v849_v35  ;;  %v635_v23 = vadd.f32 %v1057_v2, %v621_v6  ;;  %v598_v44 = vmul.f32 %v937_v20, %v1059_v7  ;;  %1575 = vst [vmem:[#allocation42_spill] sm:$0xff] %v1084_v52  ;;  %v1137_v35 = vld [vmem:[#allocation2 + $0x80] sm:$0xff] }
  0x2b   :  { %v374_v5 = vadd.f32 %v366_v17, %v354_v51  ;;  %v111_v4 = vmul.f32 %v821_v24, %v851_v36  ;;  %v566_v38 = vadd.f32 %v558_v0, %v546_v14  ;;  %v131_v19 = vmul.f32 %v825_v25, %v863_v41 }
  0x2c   :  { %v470_v54 = vadd.f32 %v462_v45, %v450_v9  ;;  %v99_v18 = vadd.f32 %v91_v22, %v836_v28  ;;  %v651_v11 = vmul.f32 0.70710677, %v635_v23  ;;  %v151_v34 = vmul.f32 %v829_v26, %v1070_v61  ;;  %v1576_v45 = vld [vmem:[#allocation16_spill] sm:$0xff] }
  0x2d   :  { %v382_v42 = vadd.f32 %v374_v5, %v158_v12  ;;  %v187_v17 = vmul.f32 %v833_v27, %v839_v31  ;;  %v586_v51 = vadd.f32 %v578_v48, %v566_v38  ;;  %v199_v14 = vmul.f32 %v843_v32, %v853_v37  ;;  %v1577_v12 = vld [vmem:[#allocation18_spill] sm:$0xff]  ;;  %v1578_v48 = vld [vmem:[#allocation17_spill] sm:$0xff] }
  0x2e   :  { %v490_v6 = vadd.f32 %v482_v49, %v470_v54  ;;  %v119_v36 = vadd.f32 %v111_v4, %v99_v18  ;;  %v1090_v9 = vmul.f32 0.5, %v635_v23  ;;  %698 = verf.f32 %v651_v11  ;;  %v1579_v54 = vld [vmem:[#allocation3_spill] sm:$0xff]  ;;  %v1580_v38 = vld [vmem:[#allocation5_spill] sm:$0xff] }
  0x2f   :  { %v219_v5 = vmul.f32 %v847_v33, %v1576_v45  ;;  %v239_v0 = vmul.f32 %v857_v39, %v1577_v12  ;;  %v606_v22 = vadd.f32 %v598_v44, %v586_v51  ;;  %v207_v41 = vadd.f32 %v199_v14, %v187_v17  ;;  %v1581_v12 = vld [vmem:[#allocation7_spill] sm:$0xff]  ;;  %v1585_v14 = vld [vmem:[#allocation20_spill] sm:$0xff] }
  0x30   :  { %v139_v61 = vadd.f32 %v131_v19, %v119_v36  ;;  %v259_v31 = vmul.f32 %v876_v46, %v1084_v52  ;;  %v498_v49 = vadd.f32 %v490_v6, %v266_v10  ;;  %v295_v4 = vmul.f32 %v861_v40, %v1578_v48  ;;  %v1582_v19 = vld [vmem:[#allocation9_spill] sm:$0xff]  ;;  %v1108_v10 = vld [vmem:[#allocation2 + $0x7b] sm:$0xff] }
  0x31   :  { %v307_v23 = vmul.f32 %v894_v56, %v1579_v54  ;;  %v327_v18 = vmul.f32 %v898_v58, %v1580_v38  ;;  %v614_v11 = vadd.f32 %v606_v22, %v382_v42  ;;  %v227_v37 = vadd.f32 %v219_v5, %v207_v41  ;;  %1583 = vst [vmem:[#allocation17_spill] sm:$0xff] %v1108_v10  ;;  %v1584_v6 = vld [vmem:[#allocation19_spill] sm:$0xff]  ;;  %v1586_v42 = vld [vmem:[#allocation21_spill] sm:$0xff] }
  0x32   :  { %v159_v45 = vadd.f32 %v151_v34, %v139_v61  ;;  %v347_v36 = vmul.f32 %v902_v59, %v1581_v12  ;;  %v367_v17 = vmul.f32 %v906_v60, %v1582_v19  ;;  %v411_v51 = vmul.f32 %v912_v62, %v1584_v6  ;;  %v1587_v61 = vld [vmem:[#allocation23_spill] sm:$0xff]  ;;  %v1590_v12 = vld [vmem:[#allocation26_spill] sm:$0xff] }
  0x33   :  { %v315_v44 = vadd.f32 %v307_v23, %v295_v4  ;;  %v423_v48 = vmul.f32 %v917_v8, %v1585_v14  ;;  %v622_v54 = vadd.f32 %v614_v11, %v498_v49  ;;  %v247_v38 = vadd.f32 %v239_v0, %v227_v37  ;;  %v1118_v4 = vld [vmem:[#allocation2 + $0x7c] sm:$0xff]  ;;  %v1591_v0 = vld [vmem:[#allocation28_spill] sm:$0xff] }
  0x34   :  { %v443_v41 = vmul.f32 %v941_v50, %v1586_v42  ;;  %v463_v34 = vmul.f32 %v945_v55, %v1587_v61  ;;  %1588 = vst [vmem:[#allocation19_spill] sm:$0xff] %v1118_v4  ;;  %v1589_v23 = vld [vmem:[#allocation22_spill] sm:$0xff]  ;;  %v539_v6 = vmul.f32 %v963_v16, %v1590_v12  ;;  %v483_v37 = vmul.f32 %v949_v57, %v1108_v10 }
  0x35   :  { %v335_v5 = vadd.f32 %v327_v18, %v315_v44  ;;  %v431_v22 = vadd.f32 %v423_v48, %v411_v51  ;;  %v527_v19 = vmul.f32 %v955_v1, %v1589_v23  ;;  %v636_v14 = vadd.f32 %v1057_v2, %v622_v54  ;;  %v1592_v51 = vld [vmem:[#allocation24_spill] sm:$0xff]  ;;  %v1593_v54 = vld [vmem:[#allocation25_spill] sm:$0xff] }
  0x36   :  { %v267_v49 = vadd.f32 %v259_v31, %v247_v38  ;;  %v559_v11 = vmul.f32 %v982_v29, %v1591_v0  ;;  %v579_v48 = vmul.f32 %v986_v43, %v1592_v51  ;;  %v599_v12 = vmul.f32 %v937_v20, %v1118_v4 }
  0x37   :  { %v355_v61 = vadd.f32 %v347_v36, %v335_v5  ;;  %v451_v18 = vadd.f32 %v443_v41, %v431_v22  ;;  %v547_v44 = vadd.f32 %v539_v6, %v527_v19  ;;  %v1131_v42 = vmul.f32 0.5, %v636_v14  ;;  %v1594_v36 = vld [vmem:[#allocation27_spill] sm:$0xff]  ;;  %v1595_v5 = vld [vmem:[#allocation29_spill] sm:$0xff]  ;;  %v1597_v6 = vld [vmem:[#allocation30_spill] sm:$0xff] }
  0x38   :  { %v652_v23 = vmul.f32 0.70710677, %v636_v14  ;;  %v92_v31 = vmul.f32 %v813_v21, %v1593_v54  ;;  %v112_v19 = vmul.f32 %v821_v24, %v1594_v36  ;;  %v132_v14 = vmul.f32 %v825_v25, %v1595_v5  ;;  %v1144_v22 = vld [vmem:[#allocation2 + $0x81] sm:$0xff] }
  0x39   :  { %v375_v38 = vadd.f32 %v367_v17, %v355_v61  ;;  %v471_v10 = vadd.f32 %v463_v34, %v451_v18  ;;  %v567_v52 = vadd.f32 %v559_v11, %v547_v44  ;;  %1596 = vst [vmem:[#allocation22_spill] sm:$0xff] %v1144_v22  ;;  %v188_v4 = vmul.f32 %v833_v27, %v1597_v6  ;;  %v1598_v34 = vld [vmem:[#allocation31_spill] sm:$0xff] }
  0x3a   :  { %700 = verf.f32 %v652_v23  ;;  %v100_v41 = vadd.f32 %v92_v31, %v836_v28  ;;  %v200_v11 = vmul.f32 %v843_v32, %v1598_v34  ;;  %v152_v23 = vmul.f32 %v829_v26, %v1137_v35 }
  0x3b   :  { %v383_v54 = vadd.f32 %v375_v38, %v159_v45  ;;  %v491_v17 = vadd.f32 %v483_v37, %v471_v10  ;;  %v587_v61 = vadd.f32 %v579_v48, %v567_v52  ;;  %v699_v18 = vpop.eup %698  ;;  %v220_v28 = vmul.f32 %v847_v33, %v1004_v15  ;;  %v1599_v48 = vld [vmem:[#allocation6_spill] sm:$0xff] }
  0x3c   :  { %v120_v44 = vadd.f32 %v112_v19, %v100_v41  ;;  %v240_v31 = vmul.f32 %v857_v39, %v1014_v30  ;;  %v667_v5 = vadd.f32 1.0, %v699_v18  ;;  %v208_v6 = vadd.f32 %v200_v11, %v188_v4 }
  0x3d   :  { %v607_v36 = vadd.f32 %v599_v12, %v587_v61  ;;  %v260_v52 = vmul.f32 %v876_v46, %v1144_v22  ;;  %v296_v10 = vmul.f32 %v861_v40, %v1010_v53  ;;  %v308_v37 = vmul.f32 %v894_v56, %v743_v3  ;;  %v1600_v61 = vld [vmem:[#allocation8_spill] sm:$0xff] }
  0x3e   :  { %v140_v45 = vadd.f32 %v132_v14, %v120_v44  ;;  %v328_v38 = vmul.f32 %v898_v58, %v1599_v48  ;;  %v675_v19 = vmul.f32 %v667_v5, %v1090_v9  ;;  %v499_v41 = vadd.f32 %v491_v17, %v267_v49  ;;  %v1167_v14 = vld [vmem:[#allocation2 + $0x83] sm:$0xff]  ;;  %v1602_v44 = vld [vmem:[#allocation33_spill] sm:$0xff]  ;;  %v1603_v9 = vld [vmem:[#allocation10_spill] sm:$0xff] }
  0x3f   :  { %v615_v30 = vadd.f32 %v607_v36, %v383_v54  ;;  %v228_v18 = vadd.f32 %v220_v28, %v208_v6  ;;  %v316_v4 = vadd.f32 %v308_v37, %v296_v10  ;;  %v348_v11 = vmul.f32 %v902_v59, %v1600_v61  ;;  %1601 = vst [vmem:[#allocation30_spill] sm:$0xff] %v1167_v14  ;;  %v1604_v54 = vld [vmem:[#allocation34_spill] sm:$0xff]  ;;  %v1605_v17 = vld [vmem:[#allocation35_spill] sm:$0xff] }
  0x40   :  { %v160_v12 = vadd.f32 %v152_v23, %v140_v45  ;;  %v412_v53 = vmul.f32 %v912_v62, %v1602_v44  ;;  %683 = vst [vmem:[%s1445_s3] sm:$0xff] %v675_v19  ;;  %v368_v49 = vmul.f32 %v906_v60, %v1603_v9  ;;  %v424_v36 = vmul.f32 %v917_v8, %v1604_v54  ;;  %v1182_v6 = vld [vmem:[#allocation2 + $0x84] sm:$0xff]  ;;  %v1613_v54 = vld [vmem:[#allocation14_spill] sm:$0xff] }
  0x41   :  { %v623_v48 = vadd.f32 %v615_v30, %v499_v41  ;;  %v248_v3 = vadd.f32 %v240_v31, %v228_v18  ;;  %v336_v5 = vadd.f32 %v328_v38, %v316_v4  ;;  %v444_v23 = vmul.f32 %v941_v50, %v1605_v17  ;;  %1606 = vst [vmem:[#allocation31_spill] sm:$0xff] %v1182_v6  ;;  %v1607_v45 = vld [vmem:[#allocation36_spill] sm:$0xff]  ;;  %v1609_v17 = vld [vmem:[#allocation11_spill] sm:$0xff] }
  0x42   :  { %v464_v28 = vmul.f32 %v945_v55, %v1043_v63  ;;  %v528_v10 = vmul.f32 %v955_v1, %v1607_v45  ;;  %v432_v31 = vadd.f32 %v424_v36, %v412_v53  ;;  %v484_v37 = vmul.f32 %v949_v57, %v1167_v14  ;;  %v1608_v14 = vld [vmem:[#allocation12_spill] sm:$0xff] }
  0x43   :  { %v637_v30 = vadd.f32 %v1057_v2, %v623_v48  ;;  %v540_v38 = vmul.f32 %v963_v16, %v1039_v47  ;;  %v268_v19 = vadd.f32 %v260_v52, %v248_v3  ;;  %v356_v41 = vadd.f32 %v348_v11, %v336_v5  ;;  %v1610_v3 = vld [vmem:[#allocation13_spill] sm:$0xff]  ;;  %v1614_v9 = vld [vmem:[#allocation16_spill] sm:$0xff] }
  0x44   :  { %v560_v18 = vmul.f32 %v982_v29, %v1052_v13  ;;  %v580_v4 = vmul.f32 %v986_v43, %v1059_v7  ;;  %v452_v63 = vadd.f32 %v444_v23, %v432_v31  ;;  %v600_v48 = vmul.f32 %v937_v20, %v1182_v6  ;;  %v1611_v7 = vld [vmem:[#allocation15_spill] sm:$0xff]  ;;  %v1612_v6 = vld [vmem:[#allocation41_spill] sm:$0xff] }
  0x45   :  { %v653_v44 = vmul.f32 0.70710677, %v637_v30  ;;  %v548_v45 = vadd.f32 %v540_v38, %v528_v10  ;;  %v1197_v53 = vmul.f32 0.5, %v637_v30  ;;  %v376_v36 = vadd.f32 %v368_v49, %v356_v41 }
  0x46   :  { %v81_v47 = vmul.f32 %v1609_v17, %v1608_v14  ;;  %v93_v52 = vmul.f32 %v813_v21, %v1610_v3  ;;  %v472_v5 = vadd.f32 %v464_v28, %v452_v63  ;;  %v113_v23 = vmul.f32 %v821_v24, %v1611_v7 }
  0x47   :  { %v701_v11 = vpop.eup %700  ;;  %702 = verf.f32 %v653_v44  ;;  %v568_v13 = vadd.f32 %v560_v18, %v548_v45  ;;  %v384_v31 = vadd.f32 %v376_v36, %v160_v12  ;;  %v133_v30 = vmul.f32 %v825_v25, %v1612_v6  ;;  %v1215_v44 = vld [vmem:[#allocation2 + $0x91] sm:$0xff] }
  0x48   :  { %v668_v10 = vadd.f32 1.0, %v701_v11  ;;  %v101_v38 = vadd.f32 %v93_v52, %v81_v47  ;;  %v492_v49 = vadd.f32 %v484_v37, %v472_v5  ;;  %v189_v14 = vmul.f32 %v833_v27, %v1613_v54  ;;  %1615 = vst [vmem:[#allocation33_spill] sm:$0xff] %v1215_v44  ;;  %v1616_v47 = vld [vmem:[#allocation18_spill] sm:$0xff]  ;;  %v1620_v11 = vld [vmem:[#allocation5_spill] sm:$0xff] }
  0x49   :  { %v588_v41 = vadd.f32 %v580_v4, %v568_v13  ;;  %v201_v3 = vmul.f32 %v843_v32, %v1614_v9  ;;  %v1213_v18 = vmul.f32 0.0, %v829_v26  ;;  %v221_v12 = vmul.f32 %v847_v33, %v1616_v47  ;;  %v1617_v4 = vld [vmem:[#allocation42_spill] sm:$0xff]  ;;  %v1619_v26 = vld [vmem:[#allocation3_spill] sm:$0xff] }
  0x4a   :  { %v676_v63 = vmul.f32 %v668_v10, %v1131_v42  ;;  %v121_v28 = vadd.f32 %v113_v23, %v101_v38  ;;  %v500_v45 = vadd.f32 %v492_v49, %v268_v19  ;;  %v241_v54 = vmul.f32 %v857_v39, %v1617_v4  ;;  %v1221_v36 = vld [vmem:[#allocation2 + $0x92] sm:$0xff]  ;;  %v1621_v23 = vld [vmem:[#allocation7_spill] sm:$0xff] }
  0x4b   :  { %v608_v37 = vadd.f32 %v600_v48, %v588_v41  ;;  %v209_v13 = vadd.f32 %v201_v3, %v189_v14  ;;  %1618 = vst [vmem:[#allocation36_spill] sm:$0xff] %v1221_v36  ;;  %v297_v52 = vmul.f32 %v861_v40, %v1619_v26  ;;  %v309_v5 = vmul.f32 %v894_v56, %v1620_v11  ;;  %v1622_v38 = vld [vmem:[#allocation9_spill] sm:$0xff]  ;;  %v1629_v4 = vld [vmem:[#allocation26_spill] sm:$0xff] }
  0x4c   :  { %684 = vst [vmem:[%s1445_s3 + $0x8] sm:$0xff] %v676_v63  ;;  %v141_v42 = vadd.f32 %v133_v30, %v121_v28  ;;  %v329_v19 = vmul.f32 %v898_v58, %v1621_v23  ;;  %v261_v10 = vmul.f32 %v876_v46, %v1215_v44  ;;  %v349_v49 = vmul.f32 %v902_v59, %v1622_v38  ;;  %v1238_v14 = vld [vmem:[#allocation2 + $0x93] sm:$0xff]  ;;  %v1624_v63 = vld [vmem:[#allocation20_spill] sm:$0xff] }
  0x4d   :  { %v616_v48 = vadd.f32 %v608_v37, %v384_v31  ;;  %v229_v3 = vadd.f32 %v221_v12, %v209_v13  ;;  %v317_v41 = vadd.f32 %v309_v5, %v297_v52  ;;  %v369_v30 = vmul.f32 %v906_v60, %v1221_v36  ;;  %1623 = vst [vmem:[#allocation12_spill] sm:$0xff] %v1238_v14  ;;  %v1625_v26 = vld [vmem:[#allocation21_spill] sm:$0xff]  ;;  %v1626_v13 = vld [vmem:[#allocation23_spill] sm:$0xff] }
  0x4e   :  { %v413_v28 = vmul.f32 %v912_v62, %v1624_v63  ;;  %v425_v23 = vmul.f32 %v917_v8, %v1625_v26  ;;  %v161_v12 = vadd.f32 %v1213_v18, %v141_v42  ;;  %v445_v11 = vmul.f32 %v941_v50, %v1626_v13  ;;  %v1627_v5 = vld [vmem:[#allocation17_spill] sm:$0xff] }
  0x4f   :  { %v624_v31 = vadd.f32 %v616_v48, %v500_v45  ;;  %v249_v37 = vadd.f32 %v241_v54, %v229_v3  ;;  %v337_v38 = vadd.f32 %v329_v19, %v317_v41  ;;  %v465_v36 = vmul.f32 %v945_v55, %v1627_v5  ;;  %v1249_v44 = vld [vmem:[#allocation2 + $0x94] sm:$0xff]  ;;  %v1630_v48 = vld [vmem:[#allocation19_spill] sm:$0xff] }
  0x50   :  { %v433_v52 = vadd.f32 %v425_v23, %v413_v28  ;;  %1628 = vst [vmem:[#allocation11_spill] sm:$0xff] %v1249_v44  ;;  %v529_v63 = vmul.f32 %v955_v1, %v1629_v4  ;;  %v485_v45 = vmul.f32 %v949_v57, %v1238_v14  ;;  %v541_v54 = vmul.f32 %v963_v16, %v1591_v0 }
  0x51   :  { %v638_v47 = vadd.f32 %v1057_v2, %v624_v31  ;;  %v269_v26 = vadd.f32 %v261_v10, %v249_v37  ;;  %v357_v42 = vadd.f32 %v349_v49, %v337_v38  ;;  %v561_v23 = vmul.f32 %v982_v29, %v1592_v51  ;;  %v1631_v10 = vld [vmem:[#allocation25_spill] sm:$0xff] }
  0x52   :  { %v453_v19 = vadd.f32 %v445_v11, %v433_v52  ;;  %v581_v3 = vmul.f32 %v986_v43, %v1630_v48  ;;  %v549_v28 = vadd.f32 %v541_v54, %v529_v63  ;;  %v601_v4 = vmul.f32 %v937_v20, %v1249_v44  ;;  %v1632_v11 = vld [vmem:[#allocation27_spill] sm:$0xff]  ;;  %v1633_v48 = vld [vmem:[#allocation29_spill] sm:$0xff] }
  0x53   :  { %v654_v41 = vmul.f32 0.70710677, %v638_v47  ;;  %v82_v31 = vmul.f32 %v1609_v17, %v1631_v10  ;;  %v1266_v14 = vmul.f32 0.5, %v638_v47  ;;  %v377_v0 = vadd.f32 %v369_v30, %v357_v42  ;;  %v1635_v10 = vld [vmem:[#allocation32_spill] sm:$0xff] }
  0x54   :  { %v703_v37 = vpop.eup %702  ;;  %v473_v38 = vadd.f32 %v465_v36, %v453_v19  ;;  %v94_v49 = vmul.f32 %v813_v21, %v1632_v11  ;;  %v569_v51 = vadd.f32 %v561_v23, %v549_v28  ;;  %v114_v63 = vmul.f32 %v821_v24, %v1633_v48  ;;  %v1277_v19 = vld [vmem:[#allocation2 + $0x99] sm:$0xff] }
  0x55   :  { %v669_v52 = vadd.f32 1.0, %v703_v37  ;;  %704 = verf.f32 %v654_v41  ;;  %v134_v44 = vmul.f32 %v825_v25, %v1137_v35  ;;  %v190_v47 = vmul.f32 %v833_v27, %v1598_v34  ;;  %1634 = vst [vmem:[#allocation15_spill] sm:$0xff] %v1277_v19 }
  0x56   :  { %v493_v54 = vadd.f32 %v485_v45, %v473_v38  ;;  %v102_v5 = vadd.f32 %v94_v49, %v82_v31  ;;  %v385_v36 = vadd.f32 %v377_v0, %v161_v12  ;;  %v589_v42 = vadd.f32 %v581_v3, %v569_v51  ;;  %v1288_v51 = vld [vmem:[#allocation2 + $0x9a] sm:$0xff] }
  0x57   :  { %v677_v30 = vmul.f32 %v669_v52, %v1197_v53  ;;  %v202_v23 = vmul.f32 %v843_v32, %v1004_v15  ;;  %v222_v45 = vmul.f32 %v847_v33, %v1635_v10  ;;  %v242_v31 = vmul.f32 %v857_v39, %v1144_v22  ;;  %1636 = vst [vmem:[#allocation41_spill] sm:$0xff] %v1288_v51  ;;  %v1637_v53 = vld [vmem:[#allocation4_spill] sm:$0xff]  ;;  %v1638_v3 = vld [vmem:[#allocation6_spill] sm:$0xff] }
  0x58   :  { %v501_v41 = vadd.f32 %v493_v54, %v269_v26  ;;  %v122_v28 = vadd.f32 %v114_v63, %v102_v5  ;;  %v609_v34 = vadd.f32 %v601_v4, %v589_v42  ;;  %v298_v12 = vmul.f32 %v861_v40, %v1637_v53  ;;  %v1639_v49 = vld [vmem:[#allocation10_spill] sm:$0xff] }
  0x59   :  { %685 = vst [vmem:[%s1445_s3 + $0x10] sm:$0xff] %v677_v30  ;;  %v210_v0 = vadd.f32 %v202_v23, %v190_v47  ;;  %v310_v26 = vmul.f32 %v894_v56, %v1638_v3  ;;  %v262_v37 = vmul.f32 %v876_v46, %v1277_v19  ;;  %v330_v38 = vmul.f32 %v898_v58, %v1600_v61  ;;  %v1300_v47 = vld [vmem:[#allocation2 + $0x9b] sm:$0xff] }
  0x5a   :  { %v142_v5 = vadd.f32 %v134_v44, %v122_v28  ;;  %v350_v52 = vmul.f32 %v902_v59, %v1639_v49  ;;  %v617_v4 = vadd.f32 %v609_v34, %v385_v36  ;;  %1640 = vst [vmem:[#allocation14_spill] sm:$0xff] %v1300_v47  ;;  %v1641_v30 = vld [vmem:[#allocation34_spill] sm:$0xff]  ;;  %v370_v44 = vmul.f32 %v906_v60, %v1288_v51  ;;  %v1642_v28 = vld [vmem:[#allocation35_spill] sm:$0xff] }
  0x5b   :  { %v230_v63 = vadd.f32 %v222_v45, %v210_v0  ;;  %v318_v54 = vadd.f32 %v310_v26, %v298_v12  ;;  %v414_v42 = vmul.f32 %v912_v62, %v1641_v30  ;;  %v426_v53 = vmul.f32 %v917_v8, %v1642_v28  ;;  %v1643_v61 = vld [vmem:[#allocation38_spill] sm:$0xff]  ;;  %v1646_v30 = vld [vmem:[#allocation37_spill] sm:$0xff]  ;;  %v1647_v19 = vld [vmem:[#allocation39_spill] sm:$0xff] }
  0x5c   :  { %v162_v23 = vadd.f32 %v1213_v18, %v142_v5  ;;  %v446_v3 = vmul.f32 %v941_v50, %v1643_v61  ;;  %v625_v49 = vadd.f32 %v617_v4, %v501_v41  ;;  %v1644_v34 = vld [vmem:[#allocation30_spill] sm:$0xff]  ;;  %v486_v26 = vmul.f32 %v949_v57, %v1300_v47  ;;  %v1650_v47 = vld [vmem:[#allocation13_spill] sm:$0xff] }
  0x5d   :  { %v250_v36 = vadd.f32 %v242_v31, %v230_v63  ;;  %v338_v45 = vadd.f32 %v330_v38, %v318_v54  ;;  %v466_v0 = vmul.f32 %v945_v55, %v1644_v34  ;;  %v434_v12 = vadd.f32 %v426_v53, %v414_v42  ;;  %v1315_v5 = vld [vmem:[#allocation2 + $0x9c] sm:$0xff]  ;;  %v1648_v38 = vld [vmem:[#allocation40_spill] sm:$0xff] }
  0x5e   :  { %1645 = vst [vmem:[#allocation16_spill] sm:$0xff] %v1315_v5  ;;  %v530_v51 = vmul.f32 %v955_v1, %v1646_v30  ;;  %v542_v28 = vmul.f32 %v963_v16, %v1647_v19  ;;  %v639_v61 = vadd.f32 %v1057_v2, %v625_v49  ;;  %v562_v4 = vmul.f32 %v982_v29, %v1648_v38  ;;  %v1649_v42 = vld [vmem:[#allocation31_spill] sm:$0xff] }
  0x5f   :  { %v270_v41 = vadd.f32 %v262_v37, %v250_v36  ;;  %v358_v31 = vadd.f32 %v350_v52, %v338_v45  ;;  %v454_v63 = vadd.f32 %v446_v3, %v434_v12  ;;  %v582_v53 = vmul.f32 %v986_v43, %v1649_v42 }
  0x60   :  { %v550_v54 = vadd.f32 %v542_v28, %v530_v51  ;;  %v83_v34 = vmul.f32 %v1609_v17, %v1650_v47  ;;  %v655_v22 = vmul.f32 0.70710677, %v639_v61  ;;  %v602_v19 = vmul.f32 %v937_v20, %v1315_v5  ;;  %v1651_v5 = vld [vmem:[#allocation18_spill] sm:$0xff] }
  0x61   :  { %v378_v30 = vadd.f32 %v370_v44, %v358_v31  ;;  %v95_v37 = vmul.f32 %v813_v21, %v1611_v7  ;;  %v474_v52 = vadd.f32 %v466_v0, %v454_v63  ;;  %v115_v51 = vmul.f32 %v821_v24, %v1612_v6  ;;  %v179_v63 = vld [vmem:[#allocation2 + $0xa9] sm:$0xff]  ;;  %v1652_v6 = vld [vmem:[#allocation42_spill] sm:$0xff] }
  0x62   :  { %v705_v49 = vpop.eup %704  ;;  %v570_v36 = vadd.f32 %v562_v4, %v550_v54  ;;  %v1335_v3 = vmul.f32 0.0, %v825_v25  ;;  %706 = verf.f32 %v655_v22  ;;  %v191_v31 = vmul.f32 %v833_v27, %v1614_v9 }
  0x63   :  { %v670_v28 = vadd.f32 1.0, %v705_v49  ;;  %v386_v47 = vadd.f32 %v378_v30, %v162_v23  ;;  %v103_v45 = vadd.f32 %v95_v37, %v83_v34  ;;  %v494_v44 = vadd.f32 %v486_v26, %v474_v52  ;;  %v1653_v23 = vld [vmem:[#allocation33_spill] sm:$0xff] }
  0x64   :  { %v590_v12 = vadd.f32 %v582_v53, %v570_v36  ;;  %v203_v7 = vmul.f32 %v843_v32, %v1651_v5  ;;  %v223_v25 = vmul.f32 %v847_v33, %v1652_v6  ;;  %v647_v54 = vmul.f32 0.5, %v639_v61  ;;  %v287_v26 = vld [vmem:[#allocation2 + $0xaa] sm:$0xff]  ;;  %v1655_v53 = vld [vmem:[#allocation7_spill] sm:$0xff] }
  0x65   :  { %v678_v0 = vmul.f32 %v670_v28, %v1266_v14  ;;  %v123_v4 = vadd.f32 %v115_v51, %v103_v45  ;;  %v243_v34 = vmul.f32 %v857_v39, %v1653_v23  ;;  %v1654_v5 = vld [vmem:[#allocation5_spill] sm:$0xff]  ;;  %v311_v30 = vmul.f32 %v894_v56, %v1655_v53  ;;  %v1657_v45 = vld [vmem:[#allocation36_spill] sm:$0xff] }
  0x66   :  { %v610_v49 = vadd.f32 %v602_v19, %v590_v12  ;;  %v211_v22 = vadd.f32 %v203_v7, %v191_v31  ;;  %v299_v14 = vmul.f32 %v861_v40, %v1654_v5  ;;  %v1656_v37 = vld [vmem:[#allocation9_spill] sm:$0xff]  ;;  %v502_v19 = vadd.f32 %v494_v44, %v270_v41 }
  0x67   :  { %686 = vst [vmem:[%s1445_s3 + $0x18] sm:$0xff] %v678_v0  ;;  %v143_v9 = vadd.f32 %v1335_v3, %v123_v4  ;;  %v331_v61 = vmul.f32 %v898_v58, %v1656_v37  ;;  %v263_v51 = vmul.f32 %v876_v46, %v179_v63  ;;  %v351_v12 = vmul.f32 %v902_v59, %v1657_v45  ;;  %v1658_v31 = vld [vmem:[#allocation21_spill] sm:$0xff]  ;;  %v1663_v37 = vld [vmem:[#allocation19_spill] sm:$0xff] }
  0x68   :  { %v618_v52 = vadd.f32 %v610_v49, %v386_v47  ;;  %v231_v36 = vadd.f32 %v223_v25, %v211_v22  ;;  %v319_v28 = vadd.f32 %v311_v30, %v299_v14  ;;  %v415_v7 = vmul.f32 %v912_v62, %v1658_v31  ;;  %v403_v41 = vld [vmem:[#allocation2 + $0xab] sm:$0xff]  ;;  %v1664_v45 = vld [vmem:[#allocation11_spill] sm:$0xff] }
  0x69   :  { %v427_v0 = vmul.f32 %v917_v8, %v1626_v13  ;;  %v163_v6 = vadd.f32 %v1213_v18, %v143_v9  ;;  %v371_v23 = vmul.f32 %v906_v60, %v287_v26  ;;  %v1659_v47 = vld [vmem:[#allocation17_spill] sm:$0xff]  ;;  %v1660_v49 = vld [vmem:[#allocation12_spill] sm:$0xff]  ;;  %v583_v31 = vmul.f32 %v986_v43, %v1664_v45  ;;  %v1671_v45 = vld [vmem:[#allocation35_spill] sm:$0xff] }
  0x6a   :  { %v626_v4 = vadd.f32 %v618_v52, %v502_v19  ;;  %v447_v44 = vmul.f32 %v941_v50, %v1659_v47  ;;  %v339_v63 = vadd.f32 %v331_v61, %v319_v28  ;;  %v467_v22 = vmul.f32 %v945_v55, %v1660_v49  ;;  %v519_v5 = vld [vmem:[#allocation2 + $0xac] sm:$0xff] }
  0x6b   :  { %v435_v25 = vadd.f32 %v427_v0, %v415_v7  ;;  %v1661_v14 = vld [vmem:[#allocation28_spill] sm:$0xff]  ;;  %v251_v30 = vadd.f32 %v243_v34, %v231_v36  ;;  %v563_v19 = vmul.f32 %v982_v29, %v1663_v37  ;;  %v487_v28 = vmul.f32 %v949_v57, %v403_v41  ;;  %v1666_v37 = vld [vmem:[#allocation15_spill] sm:$0xff] }
  0x6c   :  { %v531_v53 = vmul.f32 %v955_v1, %v1661_v14  ;;  %v1372_v13 = vadd.f32 %v1057_v2, %v626_v4  ;;  %v1662_v9 = vld [vmem:[#allocation24_spill] sm:$0xff]  ;;  %v359_v52 = vadd.f32 %v351_v12, %v339_v63  ;;  %v603_v4 = vmul.f32 %v937_v20, %v519_v5 }
  0x6d   :  { %v543_v26 = vmul.f32 %v963_v16, %v1662_v9  ;;  %v455_v61 = vadd.f32 %v447_v44, %v435_v25  ;;  %v84_v34 = vmul.f32 %v1609_v17, %v1632_v11  ;;  %v96_v49 = vmul.f32 %v813_v21, %v1633_v48  ;;  %v1665_v21 = vld [vmem:[#allocation22_spill] sm:$0xff] }
  0x6e   :  { %v656_v7 = vmul.f32 0.70710677, %v1372_v13  ;;  %v379_v36 = vadd.f32 %v371_v23, %v359_v52  ;;  %v116_v12 = vmul.f32 %v821_v24, %v1137_v35  ;;  %v192_v63 = vmul.f32 %v833_v27, %v1004_v15  ;;  %v1667_v15 = vld [vmem:[#allocation6_spill] sm:$0xff] }
  0x6f   :  { %v551_v0 = vadd.f32 %v543_v26, %v531_v53  ;;  %v475_v47 = vadd.f32 %v467_v22, %v455_v61  ;;  %v707_v41 = vpop.eup %706  ;;  %v204_v25 = vmul.f32 %v843_v32, %v1635_v10  ;;  %v271_v14 = vadd.f32 %v263_v51, %v251_v30  ;;  %v180_v26 = vld [vmem:[#allocation2 + $0xb1] sm:$0xff]  ;;  %v1668_v10 = vld [vmem:[#allocation8_spill] sm:$0xff] }
  0x70   :  { %708 = verf.f32 %v656_v7  ;;  %v671_v5 = vadd.f32 1.0, %v707_v41  ;;  %v104_v11 = vadd.f32 %v96_v49, %v84_v34  ;;  %v387_v23 = vadd.f32 %v379_v36, %v163_v6  ;;  %v288_v30 = vld [vmem:[#allocation2 + $0xb2] sm:$0xff]  ;;  %v1675_v41 = vld [vmem:[#allocation39_spill] sm:$0xff] }
  0x71   :  { %v571_v44 = vadd.f32 %v563_v19, %v551_v0  ;;  %v495_v17 = vadd.f32 %v487_v28, %v475_v47  ;;  %v212_v53 = vadd.f32 %v204_v25, %v192_v63  ;;  %v224_v48 = vmul.f32 %v847_v33, %v1665_v21  ;;  %v1669_v19 = vld [vmem:[#allocation10_spill] sm:$0xff]  ;;  %v1670_v28 = vld [vmem:[#allocation41_spill] sm:$0xff] }
  0x72   :  { %v679_v24 = vmul.f32 %v671_v5, %v647_v54  ;;  %v124_v35 = vadd.f32 %v116_v12, %v104_v11  ;;  %v244_v27 = vmul.f32 %v857_v39, %v1666_v37  ;;  %v300_v32 = vmul.f32 %v861_v40, %v1667_v15  ;;  %v1672_v7 = vld [vmem:[#allocation38_spill] sm:$0xff] }
  0x73   :  { %v591_v22 = vadd.f32 %v583_v31, %v571_v44  ;;  %v312_v51 = vmul.f32 %v894_v56, %v1668_v10  ;;  %v503_v6 = vadd.f32 %v495_v17, %v271_v14  ;;  %v232_v54 = vadd.f32 %v224_v48, %v212_v53  ;;  %v404_v47 = vld [vmem:[#allocation2 + $0xb3] sm:$0xff]  ;;  %v1676_v17 = vld [vmem:[#allocation16_spill] sm:$0xff] }
  0x74   :  { %687 = vst [vmem:[%s1445_s3 + $0x20] sm:$0xff] %v679_v24  ;;  %v144_v33 = vadd.f32 %v1335_v3, %v124_v35  ;;  %v332_v52 = vmul.f32 %v898_v58, %v1669_v19  ;;  %v352_v40 = vmul.f32 %v902_v59, %v1670_v28  ;;  %v416_v56 = vmul.f32 %v912_v62, %v1671_v45  ;;  %v1674_v49 = vld [vmem:[#allocation14_spill] sm:$0xff] }
  0x75   :  { %v611_v9 = vadd.f32 %v603_v4, %v591_v22  ;;  %v320_v39 = vadd.f32 %v312_v51, %v300_v32  ;;  %v264_v31 = vmul.f32 %v876_v46, %v180_v26  ;;  %v428_v0 = vmul.f32 %v917_v8, %v1672_v7  ;;  %v1673_v4 = vld [vmem:[#allocation30_spill] sm:$0xff] }
  0x76   :  { %v448_v3 = vmul.f32 %v941_v50, %v1673_v4  ;;  %v372_v58 = vmul.f32 %v906_v60, %v288_v30  ;;  %v468_v12 = vmul.f32 %v945_v55, %v1674_v49  ;;  %v532_v62 = vmul.f32 %v955_v1, %v1675_v41  ;;  %v520_v25 = vld [vmem:[#allocation2 + $0xb4] sm:$0xff] }
  0x77   :  { %v619_v61 = vadd.f32 %v611_v9, %v387_v23  ;;  %v340_v36 = vadd.f32 %v332_v52, %v320_v39  ;;  %v436_v59 = vadd.f32 %v428_v0, %v416_v56  ;;  %v544_v46 = vmul.f32 %v963_v16, %v1648_v38 }
  0x78   :  { %v564_v8 = vmul.f32 %v982_v29, %v1649_v42  ;;  %v164_v44 = vadd.f32 %v1213_v18, %v144_v33  ;;  %v252_v63 = vadd.f32 %v244_v27, %v232_v54  ;;  %v488_v55 = vmul.f32 %v949_v57, %v404_v47 }
  0x79   :  { %v627_v34 = vadd.f32 %v619_v61, %v503_v6  ;;  %v360_v60 = vadd.f32 %v352_v40, %v340_v36  ;;  %v456_v5 = vadd.f32 %v448_v3, %v436_v59  ;;  %v552_v14 = vadd.f32 %v544_v46, %v532_v62 }
  0x7a   :  { %v584_v1 = vmul.f32 %v986_v43, %v1676_v17  ;;  %v604_v29 = vmul.f32 %v937_v20, %v520_v25  ;;  %v648_v42 = vmul.f32 0.5, %v1372_v13  ;;  %v272_v53 = vadd.f32 %v264_v31, %v252_v63 }
  0x7b   :  { %v641_v50 = vadd.f32 %v1057_v2, %v627_v34  ;;  %v380_v23 = vadd.f32 %v372_v58, %v360_v60  ;;  %v476_v38 = vadd.f32 %v468_v12, %v456_v5  ;;  %v572_v22 = vadd.f32 %v564_v8, %v552_v14 }
  0x7d   :  { %v657_v11 = vmul.f32 0.70710677, %v641_v50  ;;  %v709_v16 = vpop.eup %708  ;;  %v388_v21 = vadd.f32 %v380_v23, %v164_v44  ;;  %v496_v48 = vadd.f32 %v488_v55, %v476_v38  ;;  %v592_v24 = vadd.f32 %v584_v1, %v572_v22 }
  0x7e   :  { %v672_v18 = vadd.f32 1.0, %v709_v16  ;;  %v649_v13 = vmul.f32 0.5, %v641_v50 }
  0x7f   :  { %710 = verf.f32 %v657_v11  ;;  %v612_v35 = vadd.f32 %v604_v29, %v592_v24  ;;  %v504_v43 = vadd.f32 %v496_v48, %v272_v53 }
  0x80   :  { %v680_v57 = vmul.f32 %v672_v18, %v648_v42 }
  0x81   :  { %v620_v9 = vadd.f32 %v612_v35, %v388_v21 }
  0x82   :  { %688 = vst [vmem:[%s1445_s3 + $0x28] sm:$0xff] %v680_v57 }
  0x83   :  { %v628_v26 = vadd.f32 %v620_v9, %v504_v43 }
  0x85   :  { %v642_v37 = vadd.f32 %v1057_v2, %v628_v26 }
  0x87   :  { %v658_v20 = vmul.f32 0.70710677, %v642_v37  ;;  %v650_v51 = vmul.f32 0.5, %v642_v37 }
  0x89   :  { %712 = verf.f32 %v658_v20 }
  0x8c   :  { %v711_v27 = vpop.eup %710 }
  0x8d   :  { %v673_v15 = vadd.f32 1.0, %v711_v27 }
  0x8f   :  { %v681_v32 = vmul.f32 %v673_v15, %v649_v13 }
  0x91   :  { %689 = vst [vmem:[%s1445_s3 + $0x30] sm:$0xff] %v681_v32 }
  0x96   :  { %v713_v10 = vpop.eup %712 }
  0x97   :  { %v674_v6 = vadd.f32 1.0, %v713_v10 }
  0x99   :  { %v682_v33 = vmul.f32 %v674_v6, %v650_v51 }
  0x9b   :  { %690 = vst [vmem:[%s1445_s3 + $0x38] sm:$0xff] %v682_v33 }

</bundles_post_ra>
